<compile_context>
chip_gen: v7x
topology: tpu7x:2x2x1
jax: 0.10.0
libtpu: 0.0.40
codegen_flags: <defaults>
</compile_context>

<pallas_src>
import jax
import jax.numpy as jnp
from jax.experimental import pallas as pl
from jax.experimental.pallas import tpu as pltpu


def _round_up(n, m):
    return ((n + m - 1) // m) * m


# ----------------------------------------------------------------------------------
# Kernel
# ----------------------------------------------------------------------------------
def lstm_kernel(x_ref, w_ih_ref, w_hh_ref, b_ref, w_lin_ref, b_lin_ref,
                out_ref, pre_ref):
    # Shapes (all padded, static):
    #   x_ref:     (T*Bp, I)       time-major, batch-padded, flattened, f32 (I==1 path)
    #   w_ih_ref:  (I, 4*Hp)       f32 when I==1 (VPU path), else compute_dtype
    #   w_hh_ref:  (Hp, 4*Hp)      compute_dtype (bf16 by default)
    #   b_ref:     (1, 4*Hp)       b_ih + b_hh, gate-block padded, f32
    #   w_lin_ref: (Hp, Op)        compute_dtype
    #   b_lin_ref: (1, Op)         f32
    #   out_ref:   (Bp, Op)        f32
    #   pre_ref:   (T*Bp, 4*Hp)    VMEM scratch: hoisted input projections, f32
    Bp = out_ref.shape[0]
    Hp = w_hh_ref.shape[0]
    I = x_ref.shape[1]
    T = x_ref.shape[0] // Bp
    mm_dtype = w_hh_ref.dtype

    # ---- Hoisted input projection for all timesteps. ----
    if I == 1:
        # K=1 contraction would waste the MXU systolic array; a VPU broadcast outer
        # product (with bias folded into the same pass) is ~a handful of vreg ops.
        pre_ref[...] = x_ref[...] * w_ih_ref[...] + b_ref[...]
    else:
        pre_ref[...] = (
            jnp.dot(x_ref[...], w_ih_ref[...], preferred_element_type=jnp.float32)
            + b_ref[...])

    # ---- Serial recurrence.  T is small & static -> fully unrolled; only
    #      h @ W_hh + whole-vreg gate elementwise sit on the critical path.
    #      Gates / c / h / accumulation stay f32; only the matmul operands are cast.
    h = jnp.zeros((Bp, Hp), jnp.float32)
    c = jnp.zeros((Bp, Hp), jnp.float32)

    for t in range(T):
        gates = (pre_ref[t * Bp:(t + 1) * Bp, :]
                 + jnp.dot(h.astype(mm_dtype), w_hh_ref[...],
                           preferred_element_type=jnp.float32))     # (Bp, 4*Hp) f32
        # Gate blocks are Hp wide (multiple of 128) -> full-vreg slices, no masking.
        i_g = jax.nn.sigmoid(gates[:, 0 * Hp:1 * Hp])
        f_g = jax.nn.sigmoid(gates[:, 1 * Hp:2 * Hp])
        g_g = jnp.tanh(gates[:, 2 * Hp:3 * Hp])
        o_g = jax.nn.sigmoid(gates[:, 3 * Hp:4 * Hp])
        c = f_g * c + i_g * g_g
        h = o_g * jnp.tanh(c)

    # ---- Final Linear on the last hidden state; lane-dense padded output. ----
    out_ref[...] = (jnp.dot(h.astype(w_lin_ref.dtype), w_lin_ref[...],
                            preferred_element_type=jnp.float32)
                    + b_lin_ref[...])


# ----------------------------------------------------------------------------------
# One-time weight preprocessing (NOT on the per-call path)
# ----------------------------------------------------------------------------------
def prepare_weights(w_ih, w_hh, b_ih, b_hh, w_lin, b_lin,
                    *, compute_dtype=jnp.bfloat16):
    """Pad / transpose / cast the PyTorch-layout LSTM+Linear weights once.

    PyTorch packs gates as [i, f, g, o] along the 4H axis; each gate block is padded
    from H to Hp (multiple of 128) with zeros.  Zero weights + zero biases in the
    padded lanes, together with zero initial h/c, keep the padded hidden lanes
    identically 0 for the whole recurrence (g=tanh(0)=0, c stays 0, h stays 0).
    NOTE: this invariant breaks if non-zero initial states or padded-lane biases are
    ever introduced.
    """
    fourH, I = w_ih.shape
    H = fourH // 4
    O = w_lin.shape[0]
    Hp = _round_up(H, 128)    # lane multiple -> whole-vreg gate slices
    Op = _round_up(O, 128)    # lane-dense output store

    # Input projection: for I == 1 it runs on the VPU, keep it f32 (v5e has no bf16
    # VPU); for I > 1 it runs on the MXU, use compute_dtype.
    in_dtype = jnp.float32 if I == 1 else compute_dtype

    w_ih_p = jnp.pad(w_ih.reshape(4, H, I), ((0, 0), (0, Hp - H), (0, 0)))
    w_ih_p = jnp.transpose(w_ih_p.reshape(4 * Hp, I)).astype(in_dtype)        # (I, 4Hp)

    w_hh_p = jnp.pad(w_hh.reshape(4, H, H), ((0, 0), (0, Hp - H), (0, Hp - H)))
    w_hh_p = jnp.transpose(w_hh_p.reshape(4 * Hp, Hp)).astype(compute_dtype)  # (Hp, 4Hp)

    b_p = jnp.pad((b_ih + b_hh).reshape(4, H), ((0, 0), (0, Hp - H)))
    b_p = b_p.reshape(1, 4 * Hp).astype(jnp.float32)                          # (1, 4Hp)

    w_lin_p = jnp.pad(w_lin, ((0, Op - O), (0, Hp - H)))
    w_lin_p = jnp.transpose(w_lin_p).astype(compute_dtype)                    # (Hp, Op)
    b_lin_p = jnp.pad(b_lin, (0, Op - O)).reshape(1, Op).astype(jnp.float32)  # (1, Op)

    weights = (w_ih_p, w_hh_p, b_p, w_lin_p, b_lin_p)
    return jax.block_until_ready(jax.device_put(weights))


# ----------------------------------------------------------------------------------
# Per-call forward (activations only): pad x, launch kernel, slice result
# ----------------------------------------------------------------------------------
def lstm_forward(x, prepared_weights, out_size):
    """x: (B, T, I) batch-first, like nn.LSTM(batch_first=True).  Returns (B, O)."""
    w_ih_p, w_hh_p, b_p, w_lin_p, b_lin_p = prepared_weights
    B, T, I = x.shape
    Hp = w_hh_p.shape[0]
    Op = w_lin_p.shape[1]
    Bp = _round_up(B, 8)      # sublane multiple

    # Time-major, batch padded, flattened so the input projection covers all T at once.
    x_tm = jnp.transpose(x, (1, 0, 2)).astype(w_ih_p.dtype)        # (T, B, I)
    x_tm = jnp.pad(x_tm, ((0, 0), (0, Bp - B), (0, 0)))            # (T, Bp, I)
    x_2d = x_tm.reshape(T * Bp, I)                                 # (T*Bp, I)

    out_padded = pl.pallas_call(
        lstm_kernel,
        out_shape=jax.ShapeDtypeStruct((Bp, Op), jnp.float32),
        in_specs=[pl.BlockSpec(memory_space=pltpu.MemorySpace.VMEM)] * 6,
        out_specs=pl.BlockSpec(memory_space=pltpu.MemorySpace.VMEM),
        scratch_shapes=[pltpu.VMEM((T * Bp, 4 * Hp), jnp.float32)],
    )(x_2d, w_ih_p, w_hh_p, b_p, w_lin_p, b_lin_p)

    return out_padded[:B, :out_size]


# ----------------------------------------------------------------------------------
# Pure-JAX reference matching torch.nn.LSTM + Linear semantics (hidden0 = zeros)
# ----------------------------------------------------------------------------------
def lstm_ref(x, w_ih, w_hh, b_ih, b_hh, w_lin, b_lin):
    H = w_hh.shape[1]

    def step(carry, x_t):
        h, c = carry
        gates = x_t @ w_ih.T + b_ih + h @ w_hh.T + b_hh
        i_g = jax.nn.sigmoid(gates[:, 0 * H:1 * H])
        f_g = jax.nn.sigmoid(gates[:, 1 * H:2 * H])
        g_g = jnp.tanh(gates[:, 2 * H:3 * H])
        o_g = jax.nn.sigmoid(gates[:, 3 * H:4 * H])
        c_new = f_g * c + i_g * g_g
        h_new = o_g * jnp.tanh(c_new)
        return (h_new, c_new), None

    B = x.shape[0]
    h0 = jnp.zeros((B, H), jnp.float32)
    c0 = jnp.zeros((B, H), jnp.float32)
    (h_T, _), _ = jax.lax.scan(step, (h0, c0), jnp.transpose(x, (1, 0, 2)))
    return h_T @ w_lin.T + b_lin


if __name__ == "__main__":
    # Shapes consistent with the module: input_size=1 (hardcoded in nn.LSTM(1, H)),
    # hidden=32, output_size=1, batch=2, seq=8.
    B, T, I, H, O = 2, 8, 1, 32, 1

    key = jax.random.PRNGKey(0)
    ks = jax.random.split(key, 7)
    bound = 1.0 / jnp.sqrt(H)

    x = jax.random.normal(ks[0], (B, T, I), dtype=jnp.float32)
    w_ih = jax.random.uniform(ks[1], (4 * H, I), jnp.float32, -bound, bound)
    w_hh = jax.random.uniform(ks[2], (4 * H, H), jnp.float32, -bound, bound)
    b_ih = jax.random.uniform(ks[3], (4 * H,), jnp.float32, -bound, bound)
    b_hh = jax.random.uniform(ks[4], (4 * H,), jnp.float32, -bound, bound)
    w_lin = jax.random.uniform(ks[5], (O, H), jnp.float32, -bound, bound)
    b_lin = jax.random.uniform(ks[6], (O,), jnp.float32, -bound, bound)

    ref = lstm_ref(x, w_ih, w_hh, b_ih, b_hh, w_lin, b_lin)

    # --- f32 MXU-operand path: tight parity check against the PyTorch-style ref. ---
    prep_f32 = prepare_weights(w_ih, w_hh, b_ih, b_hh, w_lin, b_lin,
                               compute_dtype=jnp.float32)
    run_f32 = jax.jit(lambda xx: lstm_forward(xx, prep_f32, O))
    out_f32 = jax.block_until_ready(run_f32(x))
    assert out_f32.shape == (B, O)
    assert jnp.allclose(out_f32, ref, atol=1e-5, rtol=1e-5), (out_f32, ref)

    # --- Default path: bf16 MXU operands, f32 gates/state (single-pass MXU). ---
    prep_bf16 = prepare_weights(w_ih, w_hh, b_ih, b_hh, w_lin, b_lin)
    run_bf16 = jax.jit(lambda xx: lstm_forward(xx, prep_bf16, O))
    out_bf16 = jax.block_until_ready(run_bf16(x))
    assert out_bf16.shape == (B, O)
    assert jnp.allclose(out_bf16, ref, atol=5e-2, rtol=5e-2), (out_bf16, ref)

    print("KERNEL_OK")
</pallas_src>

<mosaic_0001>
module attributes {stable_mosaic.version = 11 : i64} {
  func.func @lstm_kernel(%arg0: memref<64x1xf32, #tpu.memory_space<vmem>>, %arg1: memref<1x512xf32, #tpu.memory_space<vmem>>, %arg2: memref<128x512xf32, #tpu.memory_space<vmem>>, %arg3: memref<1x512xf32, #tpu.memory_space<vmem>>, %arg4: memref<128x128xf32, #tpu.memory_space<vmem>>, %arg5: memref<1x128xf32, #tpu.memory_space<vmem>>, %arg6: memref<8x128xf32, #tpu.memory_space<vmem>>, %arg7: memref<64x512xf32, #tpu.memory_space<vmem>>) attributes {dimension_semantics = [], scalar_prefetch = 0 : i64, scratch_operands = 1 : i64, tpu.core_type = #tpu.core_type<tc>} {
    %c0 = arith.constant 0 : index
    %c0_0 = arith.constant 0 : index
    %0 = vector.load %arg0[%c0, %c0_0] : memref<64x1xf32, #tpu.memory_space<vmem>>, vector<64x1xf32>
    %c0_1 = arith.constant 0 : index
    %c0_2 = arith.constant 0 : index
    %1 = vector.load %arg1[%c0_1, %c0_2] : memref<1x512xf32, #tpu.memory_space<vmem>>, vector<1x512xf32>
    %2 = vector.broadcast %0 : vector<64x1xf32> to vector<64x512xf32>
    %3 = vector.broadcast %1 : vector<1x512xf32> to vector<64x512xf32>
    %4 = arith.mulf %2, %3 : vector<64x512xf32>
    %c0_3 = arith.constant 0 : index
    %c0_4 = arith.constant 0 : index
    %5 = vector.load %arg3[%c0_3, %c0_4] : memref<1x512xf32, #tpu.memory_space<vmem>>, vector<1x512xf32>
    %6 = vector.broadcast %5 : vector<1x512xf32> to vector<64x512xf32>
    %7 = arith.addf %4, %6 : vector<64x512xf32>
    %c0_5 = arith.constant 0 : index
    %c0_6 = arith.constant 0 : index
    %8 = vector.load %arg7[%c0_5, %c0_6] : memref<64x512xf32, #tpu.memory_space<vmem>>, vector<64x512xf32>
    tpu.vector_store %arg7[%c0_5, %c0_6], %7 {strides = array<i32>} : memref<64x512xf32, #tpu.memory_space<vmem>>, vector<64x512xf32>,
    %cst = arith.constant 0.000000e+00 : f32
    %9 = vector.broadcast %cst : f32 to vector<8x128xf32>
    %cst_7 = arith.constant 0.000000e+00 : f32
    %10 = vector.broadcast %cst_7 : f32 to vector<8x128xf32>
    %c0_8 = arith.constant 0 : index
    %c0_9 = arith.constant 0 : index
    %11 = vector.load %arg7[%c0_8, %c0_9] : memref<64x512xf32, #tpu.memory_space<vmem>>, vector<8x512xf32>
    %c0_10 = arith.constant 0 : index
    %c0_11 = arith.constant 0 : index
    %12 = vector.load %arg2[%c0_10, %c0_11] : memref<128x512xf32, #tpu.memory_space<vmem>>, vector<128x512xf32>
    %cst_12 = arith.constant dense<0.000000e+00> : vector<8x512xf32>
    %13 = tpu.matmul %9, %12, %cst_12 {dimension_numbers = #tpu.dot_dimension_numbers<[1], [0], [0], [1], [0, 0, 1, 1], [], []>} : vector<8x128xf32>, vector<128x512xf32>, vector<8x512xf32> -> vector<8x512xf32>
    %14 = arith.addf %11, %13 : vector<8x512xf32>
    %15 = vector.extract_strided_slice %14 {offsets = [0, 0], sizes = [8, 128], strides = [1, 1]} : vector<8x512xf32> to vector<8x128xf32>
    %16 = arith.negf %15 : vector<8x128xf32>
    %17 = math.exp %16 : vector<8x128xf32>
    %cst_13 = arith.constant 1.000000e+00 : f32
    %18 = vector.broadcast %cst_13 : f32 to vector<8x128xf32>
    %19 = arith.addf %18, %17 : vector<8x128xf32>
    %20 = arith.divf %18, %19 : vector<8x128xf32>
    %21 = vector.extract_strided_slice %14 {offsets = [0, 128], sizes = [8, 128], strides = [1, 1]} : vector<8x512xf32> to vector<8x128xf32>
    %22 = arith.negf %21 : vector<8x128xf32>
    %23 = math.exp %22 : vector<8x128xf32>
    %cst_14 = arith.constant 1.000000e+00 : f32
    %24 = vector.broadcast %cst_14 : f32 to vector<8x128xf32>
    %25 = arith.addf %24, %23 : vector<8x128xf32>
    %26 = arith.divf %24, %25 : vector<8x128xf32>
    %27 = vector.extract_strided_slice %14 {offsets = [0, 256], sizes = [8, 128], strides = [1, 1]} : vector<8x512xf32> to vector<8x128xf32>
    %28 = math.tanh %27 : vector<8x128xf32>
    %29 = vector.extract_strided_slice %14 {offsets = [0, 384], sizes = [8, 128], strides = [1, 1]} : vector<8x512xf32> to vector<8x128xf32>
    %30 = arith.negf %29 : vector<8x128xf32>
    %31 = math.exp %30 : vector<8x128xf32>
    %cst_15 = arith.constant 1.000000e+00 : f32
    %32 = vector.broadcast %cst_15 : f32 to vector<8x128xf32>
    %33 = arith.addf %32, %31 : vector<8x128xf32>
    %34 = arith.divf %32, %33 : vector<8x128xf32>
    %35 = arith.mulf %26, %10 : vector<8x128xf32>
    %36 = arith.mulf %20, %28 : vector<8x128xf32>
    %37 = arith.addf %35, %36 : vector<8x128xf32>
    %38 = math.tanh %37 : vector<8x128xf32>
    %39 = arith.mulf %34, %38 : vector<8x128xf32>
    %c8 = arith.constant 8 : index
    %c0_16 = arith.constant 0 : index
    %40 = vector.load %arg7[%c8, %c0_16] : memref<64x512xf32, #tpu.memory_space<vmem>>, vector<8x512xf32>
    %c0_17 = arith.constant 0 : index
    %c0_18 = arith.constant 0 : index
    %41 = vector.load %arg2[%c0_17, %c0_18] : memref<128x512xf32, #tpu.memory_space<vmem>>, vector<128x512xf32>
    %cst_19 = arith.constant dense<0.000000e+00> : vector<8x512xf32>
    %42 = tpu.matmul %39, %41, %cst_19 {dimension_numbers = #tpu.dot_dimension_numbers<[1], [0], [0], [1], [0, 0, 1, 1], [], []>} : vector<8x128xf32>, vector<128x512xf32>, vector<8x512xf32> -> vector<8x512xf32>
    %43 = arith.addf %40, %42 : vector<8x512xf32>
    %44 = vector.extract_strided_slice %43 {offsets = [0, 0], sizes = [8, 128], strides = [1, 1]} : vector<8x512xf32> to vector<8x128xf32>
    %45 = arith.negf %44 : vector<8x128xf32>
    %46 = math.exp %45 : vector<8x128xf32>
    %cst_20 = arith.constant 1.000000e+00 : f32
    %47 = vector.broadcast %cst_20 : f32 to vector<8x128xf32>
    %48 = arith.addf %47, %46 : vector<8x128xf32>
    %49 = arith.divf %47, %48 : vector<8x128xf32>
    %50 = vector.extract_strided_slice %43 {offsets = [0, 128], sizes = [8, 128], strides = [1, 1]} : vector<8x512xf32> to vector<8x128xf32>
    %51 = arith.negf %50 : vector<8x128xf32>
    %52 = math.exp %51 : vector<8x128xf32>
    %cst_21 = arith.constant 1.000000e+00 : f32
    %53 = vector.broadcast %cst_21 : f32 to vector<8x128xf32>
    %54 = arith.addf %53, %52 : vector<8x128xf32>
    %55 = arith.divf %53, %54 : vector<8x128xf32>
    %56 = vector.extract_strided_slice %43 {offsets = [0, 256], sizes = [8, 128], strides = [1, 1]} : vector<8x512xf32> to vector<8x128xf32>
    %57 = math.tanh %56 : vector<8x128xf32>
    %58 = vector.extract_strided_slice %43 {offsets = [0, 384], sizes = [8, 128], strides = [1, 1]} : vector<8x512xf32> to vector<8x128xf32>
    %59 = arith.negf %58 : vector<8x128xf32>
    %60 = math.exp %59 : vector<8x128xf32>
    %cst_22 = arith.constant 1.000000e+00 : f32
    %61 = vector.broadcast %cst_22 : f32 to vector<8x128xf32>
    %62 = arith.addf %61, %60 : vector<8x128xf32>
    %63 = arith.divf %61, %62 : vector<8x128xf32>
    %64 = arith.mulf %55, %37 : vector<8x128xf32>
    %65 = arith.mulf %49, %57 : vector<8x128xf32>
    %66 = arith.addf %64, %65 : vector<8x128xf32>
    %67 = math.tanh %66 : vector<8x128xf32>
    %68 = arith.mulf %63, %67 : vector<8x128xf32>
    %c16 = arith.constant 16 : index
    %c0_23 = arith.constant 0 : index
    %69 = vector.load %arg7[%c16, %c0_23] : memref<64x512xf32, #tpu.memory_space<vmem>>, vector<8x512xf32>
    %c0_24 = arith.constant 0 : index
    %c0_25 = arith.constant 0 : index
    %70 = vector.load %arg2[%c0_24, %c0_25] : memref<128x512xf32, #tpu.memory_space<vmem>>, vector<128x512xf32>
    %cst_26 = arith.constant dense<0.000000e+00> : vector<8x512xf32>
    %71 = tpu.matmul %68, %70, %cst_26 {dimension_numbers = #tpu.dot_dimension_numbers<[1], [0], [0], [1], [0, 0, 1, 1], [], []>} : vector<8x128xf32>, vector<128x512xf32>, vector<8x512xf32> -> vector<8x512xf32>
    %72 = arith.addf %69, %71 : vector<8x512xf32>
    %73 = vector.extract_strided_slice %72 {offsets = [0, 0], sizes = [8, 128], strides = [1, 1]} : vector<8x512xf32> to vector<8x128xf32>
    %74 = arith.negf %73 : vector<8x128xf32>
    %75 = math.exp %74 : vector<8x128xf32>
    %cst_27 = arith.constant 1.000000e+00 : f32
    %76 = vector.broadcast %cst_27 : f32 to vector<8x128xf32>
    %77 = arith.addf %76, %75 : vector<8x128xf32>
    %78 = arith.divf %76, %77 : vector<8x128xf32>
    %79 = vector.extract_strided_slice %72 {offsets = [0, 128], sizes = [8, 128], strides = [1, 1]} : vector<8x512xf32> to vector<8x128xf32>
    %80 = arith.negf %79 : vector<8x128xf32>
    %81 = math.exp %80 : vector<8x128xf32>
    %cst_28 = arith.constant 1.000000e+00 : f32
    %82 = vector.broadcast %cst_28 : f32 to vector<8x128xf32>
    %83 = arith.addf %82, %81 : vector<8x128xf32>
    %84 = arith.divf %82, %83 : vector<8x128xf32>
    %85 = vector.extract_strided_slice %72 {offsets = [0, 256], sizes = [8, 128], strides = [1, 1]} : vector<8x512xf32> to vector<8x128xf32>
    %86 = math.tanh %85 : vector<8x128xf32>
    %87 = vector.extract_strided_slice %72 {offsets = [0, 384], sizes = [8, 128], strides = [1, 1]} : vector<8x512xf32> to vector<8x128xf32>
    %88 = arith.negf %87 : vector<8x128xf32>
    %89 = math.exp %88 : vector<8x128xf32>
    %cst_29 = arith.constant 1.000000e+00 : f32
    %90 = vector.broadcast %cst_29 : f32 to vector<8x128xf32>
    %91 = arith.addf %90, %89 : vector<8x128xf32>
    %92 = arith.divf %90, %91 : vector<8x128xf32>
    %93 = arith.mulf %84, %66 : vector<8x128xf32>
    %94 = arith.mulf %78, %86 : vector<8x128xf32>
    %95 = arith.addf %93, %94 : vector<8x128xf32>
    %96 = math.tanh %95 : vector<8x128xf32>
    %97 = arith.mulf %92, %96 : vector<8x128xf32>
    %c24 = arith.constant 24 : index
    %c0_30 = arith.constant 0 : index
    %98 = vector.load %arg7[%c24, %c0_30] : memref<64x512xf32, #tpu.memory_space<vmem>>, vector<8x512xf32>
    %c0_31 = arith.constant 0 : index
    %c0_32 = arith.constant 0 : index
    %99 = vector.load %arg2[%c0_31, %c0_32] : memref<128x512xf32, #tpu.memory_space<vmem>>, vector<128x512xf32>
    %cst_33 = arith.constant dense<0.000000e+00> : vector<8x512xf32>
    %100 = tpu.matmul %97, %99, %cst_33 {dimension_numbers = #tpu.dot_dimension_numbers<[1], [0], [0], [1], [0, 0, 1, 1], [], []>} : vector<8x128xf32>, vector<128x512xf32>, vector<8x512xf32> -> vector<8x512xf32>
    %101 = arith.addf %98, %100 : vector<8x512xf32>
    %102 = vector.extract_strided_slice %101 {offsets = [0, 0], sizes = [8, 128], strides = [1, 1]} : vector<8x512xf32> to vector<8x128xf32>
    %103 = arith.negf %102 : vector<8x128xf32>
    %104 = math.exp %103 : vector<8x128xf32>
    %cst_34 = arith.constant 1.000000e+00 : f32
    %105 = vector.broadcast %cst_34 : f32 to vector<8x128xf32>
    %106 = arith.addf %105, %104 : vector<8x128xf32>
    %107 = arith.divf %105, %106 : vector<8x128xf32>
    %108 = vector.extract_strided_slice %101 {offsets = [0, 128], sizes = [8, 128], strides = [1, 1]} : vector<8x512xf32> to vector<8x128xf32>
    %109 = arith.negf %108 : vector<8x128xf32>
    %110 = math.exp %109 : vector<8x128xf32>
    %cst_35 = arith.constant 1.000000e+00 : f32
    %111 = vector.broadcast %cst_35 : f32 to vector<8x128xf32>
    %112 = arith.addf %111, %110 : vector<8x128xf32>
    %113 = arith.divf %111, %112 : vector<8x128xf32>
    %114 = vector.extract_strided_slice %101 {offsets = [0, 256], sizes = [8, 128], strides = [1, 1]} : vector<8x512xf32> to vector<8x128xf32>
    %115 = math.tanh %114 : vector<8x128xf32>
    %116 = vector.extract_strided_slice %101 {offsets = [0, 384], sizes = [8, 128], strides = [1, 1]} : vector<8x512xf32> to vector<8x128xf32>
    %117 = arith.negf %116 : vector<8x128xf32>
    %118 = math.exp %117 : vector<8x128xf32>
    %cst_36 = arith.constant 1.000000e+00 : f32
    %119 = vector.broadcast %cst_36 : f32 to vector<8x128xf32>
    %120 = arith.addf %119, %118 : vector<8x128xf32>
    %121 = arith.divf %119, %120 : vector<8x128xf32>
    %122 = arith.mulf %113, %95 : vector<8x128xf32>
    %123 = arith.mulf %107, %115 : vector<8x128xf32>
    %124 = arith.addf %122, %123 : vector<8x128xf32>
    %125 = math.tanh %124 : vector<8x128xf32>
    %126 = arith.mulf %121, %125 : vector<8x128xf32>
    %c32 = arith.constant 32 : index
    %c0_37 = arith.constant 0 : index
    %127 = vector.load %arg7[%c32, %c0_37] : memref<64x512xf32, #tpu.memory_space<vmem>>, vector<8x512xf32>
    %c0_38 = arith.constant 0 : index
    %c0_39 = arith.constant 0 : index
    %128 = vector.load %arg2[%c0_38, %c0_39] : memref<128x512xf32, #tpu.memory_space<vmem>>, vector<128x512xf32>
    %cst_40 = arith.constant dense<0.000000e+00> : vector<8x512xf32>
    %129 = tpu.matmul %126, %128, %cst_40 {dimension_numbers = #tpu.dot_dimension_numbers<[1], [0], [0], [1], [0, 0, 1, 1], [], []>} : vector<8x128xf32>, vector<128x512xf32>, vector<8x512xf32> -> vector<8x512xf32>
    %130 = arith.addf %127, %129 : vector<8x512xf32>
    %131 = vector.extract_strided_slice %130 {offsets = [0, 0], sizes = [8, 128], strides = [1, 1]} : vector<8x512xf32> to vector<8x128xf32>
    %132 = arith.negf %131 : vector<8x128xf32>
    %133 = math.exp %132 : vector<8x128xf32>
    %cst_41 = arith.constant 1.000000e+00 : f32
    %134 = vector.broadcast %cst_41 : f32 to vector<8x128xf32>
    %135 = arith.addf %134, %133 : vector<8x128xf32>
    %136 = arith.divf %134, %135 : vector<8x128xf32>
    %137 = vector.extract_strided_slice %130 {offsets = [0, 128], sizes = [8, 128], strides = [1, 1]} : vector<8x512xf32> to vector<8x128xf32>
    %138 = arith.negf %137 : vector<8x128xf32>
    %139 = math.exp %138 : vector<8x128xf32>
    %cst_42 = arith.constant 1.000000e+00 : f32
    %140 = vector.broadcast %cst_42 : f32 to vector<8x128xf32>
    %141 = arith.addf %140, %139 : vector<8x128xf32>
    %142 = arith.divf %140, %141 : vector<8x128xf32>
    %143 = vector.extract_strided_slice %130 {offsets = [0, 256], sizes = [8, 128], strides = [1, 1]} : vector<8x512xf32> to vector<8x128xf32>
    %144 = math.tanh %143 : vector<8x128xf32>
    %145 = vector.extract_strided_slice %130 {offsets = [0, 384], sizes = [8, 128], strides = [1, 1]} : vector<8x512xf32> to vector<8x128xf32>
    %146 = arith.negf %145 : vector<8x128xf32>
    %147 = math.exp %146 : vector<8x128xf32>
    %cst_43 = arith.constant 1.000000e+00 : f32
    %148 = vector.broadcast %cst_43 : f32 to vector<8x128xf32>
    %149 = arith.addf %148, %147 : vector<8x128xf32>
    %150 = arith.divf %148, %149 : vector<8x128xf32>
    %151 = arith.mulf %142, %124 : vector<8x128xf32>
    %152 = arith.mulf %136, %144 : vector<8x128xf32>
    %153 = arith.addf %151, %152 : vector<8x128xf32>
    %154 = math.tanh %153 : vector<8x128xf32>
    %155 = arith.mulf %150, %154 : vector<8x128xf32>
    %c40 = arith.constant 40 : index
    %c0_44 = arith.constant 0 : index
    %156 = vector.load %arg7[%c40, %c0_44] : memref<64x512xf32, #tpu.memory_space<vmem>>, vector<8x512xf32>
    %c0_45 = arith.constant 0 : index
    %c0_46 = arith.constant 0 : index
    %157 = vector.load %arg2[%c0_45, %c0_46] : memref<128x512xf32, #tpu.memory_space<vmem>>, vector<128x512xf32>
    %cst_47 = arith.constant dense<0.000000e+00> : vector<8x512xf32>
    %158 = tpu.matmul %155, %157, %cst_47 {dimension_numbers = #tpu.dot_dimension_numbers<[1], [0], [0], [1], [0, 0, 1, 1], [], []>} : vector<8x128xf32>, vector<128x512xf32>, vector<8x512xf32> -> vector<8x512xf32>
    %159 = arith.addf %156, %158 : vector<8x512xf32>
    %160 = vector.extract_strided_slice %159 {offsets = [0, 0], sizes = [8, 128], strides = [1, 1]} : vector<8x512xf32> to vector<8x128xf32>
    %161 = arith.negf %160 : vector<8x128xf32>
    %162 = math.exp %161 : vector<8x128xf32>
    %cst_48 = arith.constant 1.000000e+00 : f32
    %163 = vector.broadcast %cst_48 : f32 to vector<8x128xf32>
    %164 = arith.addf %163, %162 : vector<8x128xf32>
    %165 = arith.divf %163, %164 : vector<8x128xf32>
    %166 = vector.extract_strided_slice %159 {offsets = [0, 128], sizes = [8, 128], strides = [1, 1]} : vector<8x512xf32> to vector<8x128xf32>
    %167 = arith.negf %166 : vector<8x128xf32>
    %168 = math.exp %167 : vector<8x128xf32>
    %cst_49 = arith.constant 1.000000e+00 : f32
    %169 = vector.broadcast %cst_49 : f32 to vector<8x128xf32>
    %170 = arith.addf %169, %168 : vector<8x128xf32>
    %171 = arith.divf %169, %170 : vector<8x128xf32>
    %172 = vector.extract_strided_slice %159 {offsets = [0, 256], sizes = [8, 128], strides = [1, 1]} : vector<8x512xf32> to vector<8x128xf32>
    %173 = math.tanh %172 : vector<8x128xf32>
    %174 = vector.extract_strided_slice %159 {offsets = [0, 384], sizes = [8, 128], strides = [1, 1]} : vector<8x512xf32> to vector<8x128xf32>
    %175 = arith.negf %174 : vector<8x128xf32>
    %176 = math.exp %175 : vector<8x128xf32>
    %cst_50 = arith.constant 1.000000e+00 : f32
    %177 = vector.broadcast %cst_50 : f32 to vector<8x128xf32>
    %178 = arith.addf %177, %176 : vector<8x128xf32>
    %179 = arith.divf %177, %178 : vector<8x128xf32>
    %180 = arith.mulf %171, %153 : vector<8x128xf32>
    %181 = arith.mulf %165, %173 : vector<8x128xf32>
    %182 = arith.addf %180, %181 : vector<8x128xf32>
    %183 = math.tanh %182 : vector<8x128xf32>
    %184 = arith.mulf %179, %183 : vector<8x128xf32>
    %c48 = arith.constant 48 : index
    %c0_51 = arith.constant 0 : index
    %185 = vector.load %arg7[%c48, %c0_51] : memref<64x512xf32, #tpu.memory_space<vmem>>, vector<8x512xf32>
    %c0_52 = arith.constant 0 : index
    %c0_53 = arith.constant 0 : index
    %186 = vector.load %arg2[%c0_52, %c0_53] : memref<128x512xf32, #tpu.memory_space<vmem>>, vector<128x512xf32>
    %cst_54 = arith.constant dense<0.000000e+00> : vector<8x512xf32>
    %187 = tpu.matmul %184, %186, %cst_54 {dimension_numbers = #tpu.dot_dimension_numbers<[1], [0], [0], [1], [0, 0, 1, 1], [], []>} : vector<8x128xf32>, vector<128x512xf32>, vector<8x512xf32> -> vector<8x512xf32>
    %188 = arith.addf %185, %187 : vector<8x512xf32>
    %189 = vector.extract_strided_slice %188 {offsets = [0, 0], sizes = [8, 128], strides = [1, 1]} : vector<8x512xf32> to vector<8x128xf32>
    %190 = arith.negf %189 : vector<8x128xf32>
    %191 = math.exp %190 : vector<8x128xf32>
    %cst_55 = arith.constant 1.000000e+00 : f32
    %192 = vector.broadcast %cst_55 : f32 to vector<8x128xf32>
    %193 = arith.addf %192, %191 : vector<8x128xf32>
    %194 = arith.divf %192, %193 : vector<8x128xf32>
    %195 = vector.extract_strided_slice %188 {offsets = [0, 128], sizes = [8, 128], strides = [1, 1]} : vector<8x512xf32> to vector<8x128xf32>
    %196 = arith.negf %195 : vector<8x128xf32>
    %197 = math.exp %196 : vector<8x128xf32>
    %cst_56 = arith.constant 1.000000e+00 : f32
    %198 = vector.broadcast %cst_56 : f32 to vector<8x128xf32>
    %199 = arith.addf %198, %197 : vector<8x128xf32>
    %200 = arith.divf %198, %199 : vector<8x128xf32>
    %201 = vector.extract_strided_slice %188 {offsets = [0, 256], sizes = [8, 128], strides = [1, 1]} : vector<8x512xf32> to vector<8x128xf32>
    %202 = math.tanh %201 : vector<8x128xf32>
    %203 = vector.extract_strided_slice %188 {offsets = [0, 384], sizes = [8, 128], strides = [1, 1]} : vector<8x512xf32> to vector<8x128xf32>
    %204 = arith.negf %203 : vector<8x128xf32>
    %205 = math.exp %204 : vector<8x128xf32>
    %cst_57 = arith.constant 1.000000e+00 : f32
    %206 = vector.broadcast %cst_57 : f32 to vector<8x128xf32>
    %207 = arith.addf %206, %205 : vector<8x128xf32>
    %208 = arith.divf %206, %207 : vector<8x128xf32>
    %209 = arith.mulf %200, %182 : vector<8x128xf32>
    %210 = arith.mulf %194, %202 : vector<8x128xf32>
    %211 = arith.addf %209, %210 : vector<8x128xf32>
    %212 = math.tanh %211 : vector<8x128xf32>
    %213 = arith.mulf %208, %212 : vector<8x128xf32>
    %c56 = arith.constant 56 : index
    %c0_58 = arith.constant 0 : index
    %214 = vector.load %arg7[%c56, %c0_58] : memref<64x512xf32, #tpu.memory_space<vmem>>, vector<8x512xf32>
    %c0_59 = arith.constant 0 : index
    %c0_60 = arith.constant 0 : index
    %215 = vector.load %arg2[%c0_59, %c0_60] : memref<128x512xf32, #tpu.memory_space<vmem>>, vector<128x512xf32>
    %cst_61 = arith.constant dense<0.000000e+00> : vector<8x512xf32>
    %216 = tpu.matmul %213, %215, %cst_61 {dimension_numbers = #tpu.dot_dimension_numbers<[1], [0], [0], [1], [0, 0, 1, 1], [], []>} : vector<8x128xf32>, vector<128x512xf32>, vector<8x512xf32> -> vector<8x512xf32>
    %217 = arith.addf %214, %216 : vector<8x512xf32>
    %218 = vector.extract_strided_slice %217 {offsets = [0, 0], sizes = [8, 128], strides = [1, 1]} : vector<8x512xf32> to vector<8x128xf32>
    %219 = arith.negf %218 : vector<8x128xf32>
    %220 = math.exp %219 : vector<8x128xf32>
    %cst_62 = arith.constant 1.000000e+00 : f32
    %221 = vector.broadcast %cst_62 : f32 to vector<8x128xf32>
    %222 = arith.addf %221, %220 : vector<8x128xf32>
    %223 = arith.divf %221, %222 : vector<8x128xf32>
    %224 = vector.extract_strided_slice %217 {offsets = [0, 128], sizes = [8, 128], strides = [1, 1]} : vector<8x512xf32> to vector<8x128xf32>
    %225 = arith.negf %224 : vector<8x128xf32>
    %226 = math.exp %225 : vector<8x128xf32>
    %cst_63 = arith.constant 1.000000e+00 : f32
    %227 = vector.broadcast %cst_63 : f32 to vector<8x128xf32>
    %228 = arith.addf %227, %226 : vector<8x128xf32>
    %229 = arith.divf %227, %228 : vector<8x128xf32>
    %230 = vector.extract_strided_slice %217 {offsets = [0, 256], sizes = [8, 128], strides = [1, 1]} : vector<8x512xf32> to vector<8x128xf32>
    %231 = math.tanh %230 : vector<8x128xf32>
    %232 = vector.extract_strided_slice %217 {offsets = [0, 384], sizes = [8, 128], strides = [1, 1]} : vector<8x512xf32> to vector<8x128xf32>
    %233 = arith.negf %232 : vector<8x128xf32>
    %234 = math.exp %233 : vector<8x128xf32>
    %cst_64 = arith.constant 1.000000e+00 : f32
    %235 = vector.broadcast %cst_64 : f32 to vector<8x128xf32>
    %236 = arith.addf %235, %234 : vector<8x128xf32>
    %237 = arith.divf %235, %236 : vector<8x128xf32>
    %238 = arith.mulf %229, %211 : vector<8x128xf32>
    %239 = arith.mulf %223, %231 : vector<8x128xf32>
    %240 = arith.addf %238, %239 : vector<8x128xf32>
    %241 = math.tanh %240 : vector<8x128xf32>
    %242 = arith.mulf %237, %241 : vector<8x128xf32>
    %c0_65 = arith.constant 0 : index
    %c0_66 = arith.constant 0 : index
    %243 = vector.load %arg4[%c0_65, %c0_66] : memref<128x128xf32, #tpu.memory_space<vmem>>, vector<128x128xf32>
    %cst_67 = arith.constant dense<0.000000e+00> : vector<8x128xf32>
    %244 = tpu.matmul %242, %243, %cst_67 {dimension_numbers = #tpu.dot_dimension_numbers<[1], [0], [0], [1], [0, 0, 1, 1], [], []>} : vector<8x128xf32>, vector<128x128xf32>, vector<8x128xf32> -> vector<8x128xf32>
    %c0_68 = arith.constant 0 : index
    %c0_69 = arith.constant 0 : index
    %245 = vector.load %arg5[%c0_68, %c0_69] : memref<1x128xf32, #tpu.memory_space<vmem>>, vector<1x128xf32>
    %246 = vector.broadcast %245 : vector<1x128xf32> to vector<8x128xf32>
    %247 = arith.addf %244, %246 : vector<8x128xf32>
    %c0_70 = arith.constant 0 : index
    %c0_71 = arith.constant 0 : index
    %248 = vector.load %arg6[%c0_70, %c0_71] : memref<8x128xf32, #tpu.memory_space<vmem>>, vector<8x128xf32>
    tpu.vector_store %arg6[%c0_70, %c0_71], %247 {strides = array<i32>} : memref<8x128xf32, #tpu.memory_space<vmem>>, vector<8x128xf32>,
    return
  }
}

</mosaic_0001>

<bundles_post_ra>
// kernel: _lambda_.1
= control target key start
LH: loop header
LB: loop body
LE: loop exit
PB: predicated region body
PF: predicated region fallthrough
CT: control target
= control target key end

     0   :  { %11 = vsyncpa [#allocation4], 0  ;;  %s3148_s0 = inlined_call_operand.vmem [shape: f32[64,1], index: 0, kind: input, shape index: {}]   ;;  %s3149_s1 = inlined_call_operand.vmem [shape: f32[1,512], index: 1, kind: input, shape index: {}]   ;;  %s3150_s2 = inlined_call_operand.hbm [shape: f32[128,512], index: 2, kind: input, shape index: {}]   ;;  %s3151_s3 = inlined_call_operand.vmem [shape: f32[1,512], index: 3, kind: input, shape index: {}]   ;;  %s3152_s4 = inlined_call_operand.hbm [shape: f32[128,128], index: 4, kind: input, shape index: {}]   ;;  %s3153_s5 = inlined_call_operand.vmem [shape: f32[1,128], index: 5, kind: input, shape index: {}]   ;;  %s3154_s6 = inlined_call_operand.vmem [shape: f32[8,128], index: 6, kind: output, shape index: {}]  }
   0x1   :  { %12 = vsyncpa [#allocation6], 0  ;;  %s2596_s21 = smov [#allocation3]   ;;  %s2548_s25 = scalar_lea.hbm %s3150_s2, 8192 }
   0x2   :  { %s22_s22 = sshll.u32 %s2596_s21, 4  ;;  %p2549_p0 = scmp.ne.s32.totalorder %s3150_s2, %s2548_s25  ;;  %s23_s22 = int_to_ptr.vmem [resolvable:$true] %s22_s22 }
   0x3   :  { %p2552_p1 = scmp.lt.u32.totalorder %s2548_s25, %s3150_s2 }
   0x5   :  { %p2554_p2 = pnand %p2552_p1, %p2549_p0 }
   0x7   :  { %2557 = shalt.err (!%p2554_p2)
}
   0x8   :  { %s2558_s30 = scalar_lea.vmem %s23_s22, 8192  ;;  %p2563_p4 = scmp.lt.s32.totalorder %s23_s22, %s23_s22 }
   0x9   :  { %p2559_p3 = scmp.ne.s32.totalorder %s23_s22, %s2558_s30  ;;  %p2564_p5 = scmp.lt.s32.totalorder %s2558_s30, %s2558_s30 }
   0xb   :  { %p2565_p6 = por %p2564_p5, %p2563_p4 }
   0xd   :  { %p2566_p7 = pnand %p2565_p6, %p2559_p3 }
   0xf   :  { %2569 = shalt.err (!%p2566_p7)
}
  0x10   :  { %s2597_s7 = smov 512   ;;  %s2598_s8 = smov 32  }
  0x11   :  { %28 = dma.hbm_to_vmem [thread:$0]  %s3150_s2, 8192, %s23_s22, [#allocation4], %s2597_s7, %s2597_s7, %s2598_s8  }
  0x12   :  { %s2599_s11 = smov [#allocation5]   ;;  %s2570_s15 = scalar_lea.hbm %s3152_s4, 2048 }
  0x13   :  { %s36_s12 = sshll.u32 %s2599_s11, 4  ;;  %p2571_p8 = scmp.ne.s32.totalorder %s3152_s4, %s2570_s15  ;;  %s37_s12 = int_to_ptr.vmem [resolvable:$true] %s36_s12 }
  0x14   :  { %p2574_p9 = scmp.lt.u32.totalorder %s2570_s15, %s3152_s4 }
  0x16   :  { %p2576_p10 = pnand %p2574_p9, %p2571_p8 }
  0x18   :  { %2579 = shalt.err (!%p2576_p10)
}
  0x19   :  { %s2580_s20 = scalar_lea.vmem %s37_s12, 2048  ;;  %p2585_p12 = scmp.lt.s32.totalorder %s37_s12, %s37_s12 }
  0x1a   :  { %p2581_p11 = scmp.ne.s32.totalorder %s37_s12, %s2580_s20  ;;  %p2586_p13 = scmp.lt.s32.totalorder %s2580_s20, %s2580_s20 }
  0x1c   :  { %p2587_p0 = por %p2586_p13, %p2585_p12 }
  0x1e   :  { %p2588_p1 = pnand %p2587_p0, %p2581_p11 }
  0x20   :  { %2591 = shalt.err (!%p2588_p1)
}
  0x21   :  { %s2600_s2 = smov 128   ;;  %s2601_s21 = smov 8  }
  0x22   :  { %42 = dma.hbm_to_vmem [thread:$0]  %s3152_s4, 2048, %s37_s12, [#allocation6], %s2600_s2, %s2600_s2, %s2601_s21  }
  0x23   :  { %2592 = dma.done.wait [#allocation4], 8192  }
  0x24   :  { %2593 = vsyncadd [#allocation4], 4294959104 }
  0x25   :  { %2594 = dma.done.wait [#allocation6], 2048  }
  0x26   :  { %2595 = vsyncadd [#allocation6], 4294965248  ;;  %v2602_v0 = vmov 0.0   ;;  %v2603_v1 = vmov 0   ;;  %v244_v2 = vld [vmem:[#allocation3 + $0x8] sm:$0xff]  ;;  %v246_v4 = vld [vmem:[#allocation3 + $0x18] sm:$0xff] }
  0x27   :  { %371 = vmatprep.mubr.f32.mxu0 %v2602_v0  ;;  %442 = vmatprep.mubr.f32.mxu1 %v2602_v0  ;;  %v248_v3 = vld [vmem:[#allocation3 + $0x28] sm:$0xff]  ;;  %v250_v6 = vld [vmem:[#allocation3 + $0x38] sm:$0xff]  ;;  %v243_v7 = vld [vmem:[#allocation3] sm:$0xff]  ;;  %vm2605_vm0 = vmmov 0  }
  0x28   :  { %2418 = vset.pattern.permute.xlu0 %v2603_v1  ;;  %2419 = vset.pattern.permute.xlu1 %v2603_v1  ;;  %v2667_v5 = vpack.c.bf16 %v248_v3, %v244_v2  ;;  %v247_v8 = vld [vmem:[#allocation3 + $0x20] sm:$0xff]  ;;  %v2669_v9 = vpack.c.bf16 %v250_v6, %v246_v4  ;;  %v245_v11 = vld [vmem:[#allocation3 + $0x10] sm:$0xff]  ;;  %v252_v13 = vld [vmem:[#allocation3 + $0x48] sm:$0xff] }
  0x29   :  { %v2671_v10 = vpack.c.bf16 %v247_v8, %v243_v7  ;;  %v249_v12 = vld [vmem:[#allocation3 + $0x30] sm:$0xff]  ;;  %v256_v15 = vld [vmem:[#allocation3 + $0x68] sm:$0xff]  ;;  %v254_v16 = vld [vmem:[#allocation3 + $0x58] sm:$0xff] }
  0x2a   :  { %1873 = vmatprep.subr.bf16.mxu0 %v2667_v5  ;;  %v2674_v14 = vpack.c.bf16 %v249_v12, %v245_v11  ;;  %v258_v17 = vld [vmem:[#allocation3 + $0x78] sm:$0xff]  ;;  %1905 = vmatprep.subr.bf16.mxu1 %v2669_v9  ;;  %v2678_v18 = vpack.c.bf16 %v256_v15, %v252_v13  ;;  %v251_v20 = vld [vmem:[#allocation3 + $0x40] sm:$0xff]  ;;  %v253_v22 = vld [vmem:[#allocation3 + $0x50] sm:$0xff] }
  0x2b   :  { %1875 = vmatpush1.bf16.msra.mxu0 %v2671_v10  ;;  %v2680_v19 = vpack.c.bf16 %v258_v17, %v254_v16  ;;  %v255_v21 = vld [vmem:[#allocation3 + $0x60] sm:$0xff]  ;;  %v257_v24 = vld [vmem:[#allocation3 + $0x70] sm:$0xff]  ;;  %v260_v25 = vld [vmem:[#allocation3 + $0x88] sm:$0xff] }
  0x2c   :  { %1907 = vmatpush1.bf16.msra.mxu1 %v2674_v14  ;;  %v2683_v23 = vpack.c.bf16 %v255_v21, %v251_v20  ;;  %v264_v26 = vld [vmem:[#allocation3 + $0xa8] sm:$0xff]  ;;  %1877 = vmatprep.subr.bf16.mxu0 %v2678_v18  ;;  %v2687_v27 = vpack.c.bf16 %v257_v24, %v253_v22  ;;  %v262_v29 = vld [vmem:[#allocation3 + $0x98] sm:$0xff]  ;;  %v259_v31 = vld [vmem:[#allocation3 + $0x80] sm:$0xff] }
  0x2d   :  { %1909 = vmatprep.subr.bf16.mxu1 %v2680_v19  ;;  %v2689_v28 = vpack.c.bf16 %v264_v26, %v260_v25  ;;  %v266_v30 = vld [vmem:[#allocation3 + $0xb8] sm:$0xff]  ;;  %v263_v33 = vld [vmem:[#allocation3 + $0xa0] sm:$0xff]  ;;  %v261_v34 = vld [vmem:[#allocation3 + $0x90] sm:$0xff] }
  0x2e   :  { %v2691_v32 = vpack.c.bf16 %v266_v30, %v262_v29  ;;  %v265_v35 = vld [vmem:[#allocation3 + $0xb0] sm:$0xff]  ;;  %v2694_v36 = vpack.c.bf16 %v263_v33, %v259_v31  ;;  %v268_v37 = vld [vmem:[#allocation3 + $0xc8] sm:$0xff]  ;;  %v270_v39 = vld [vmem:[#allocation3 + $0xd8] sm:$0xff] }
  0x2f   :  { %1879 = vmatpush1.bf16.msra.mxu0 %v2683_v23  ;;  %v272_v38 = vld [vmem:[#allocation3 + $0xe8] sm:$0xff]  ;;  %v2698_v40 = vpack.c.bf16 %v265_v35, %v261_v34  ;;  %v274_v42 = vld [vmem:[#allocation3 + $0xf8] sm:$0xff]  ;;  %v267_v43 = vld [vmem:[#allocation3 + $0xc0] sm:$0xff] }
  0x30   :  { %1911 = vmatpush1.bf16.msra.mxu1 %v2687_v27  ;;  %1881 = vmatprep.subr.bf16.mxu0 %v2689_v28  ;;  %v2700_v41 = vpack.c.bf16 %v272_v38, %v268_v37  ;;  %v271_v44 = vld [vmem:[#allocation3 + $0xe0] sm:$0xff]  ;;  %v2703_v45 = vpack.c.bf16 %v274_v42, %v270_v39  ;;  %v269_v46 = vld [vmem:[#allocation3 + $0xd0] sm:$0xff]  ;;  %v276_v48 = vld [vmem:[#allocation3 + $0x108] sm:$0xff] }
  0x31   :  { %1913 = vmatprep.subr.bf16.mxu1 %v2691_v32  ;;  %v273_v47 = vld [vmem:[#allocation3 + $0xf0] sm:$0xff]  ;;  %v280_v49 = vld [vmem:[#allocation3 + $0x128] sm:$0xff]  ;;  %v278_v50 = vld [vmem:[#allocation3 + $0x118] sm:$0xff]  ;;  %v2706_v52 = vpack.c.bf16 %v271_v44, %v267_v43 }
  0x32   :  { %v282_v51 = vld [vmem:[#allocation3 + $0x138] sm:$0xff]  ;;  %v2710_v53 = vpack.c.bf16 %v273_v47, %v269_v46  ;;  %v2712_v54 = vpack.c.bf16 %v280_v49, %v276_v48  ;;  %v275_v55 = vld [vmem:[#allocation3 + $0x100] sm:$0xff]  ;;  %v277_v57 = vld [vmem:[#allocation3 + $0x110] sm:$0xff] }
  0x33   :  { %1883 = vmatpush1.bf16.msra.mxu0 %v2694_v36  ;;  %v279_v56 = vld [vmem:[#allocation3 + $0x120] sm:$0xff]  ;;  %v2715_v58 = vpack.c.bf16 %v282_v51, %v278_v50  ;;  %v281_v59 = vld [vmem:[#allocation3 + $0x130] sm:$0xff]  ;;  %v284_v60 = vld [vmem:[#allocation3 + $0x148] sm:$0xff] }
  0x34   :  { %1915 = vmatpush1.bf16.msra.mxu1 %v2698_v40  ;;  %1885 = vmatprep.subr.bf16.mxu0 %v2700_v41  ;;  %v288_v61 = vld [vmem:[#allocation3 + $0x168] sm:$0xff]  ;;  %v286_v62 = vld [vmem:[#allocation3 + $0x158] sm:$0xff]  ;;  %v2718_v1 = vpack.c.bf16 %v279_v56, %v275_v55  ;;  %v2722_v2 = vpack.c.bf16 %v281_v59, %v277_v57  ;;  %v283_v4 = vld [vmem:[#allocation3 + $0x140] sm:$0xff]  ;;  %v101_v56 = vlaneseq }
  0x35   :  { %1917 = vmatprep.subr.bf16.mxu1 %v2703_v45  ;;  %v290_v63 = vld [vmem:[#allocation3 + $0x178] sm:$0xff]  ;;  %v2724_v3 = vpack.c.bf16 %v288_v61, %v284_v60  ;;  %v287_v6 = vld [vmem:[#allocation3 + $0x160] sm:$0xff]  ;;  %v285_v7 = vld [vmem:[#allocation3 + $0x150] sm:$0xff] }
  0x36   :  { %v2727_v8 = vpack.c.bf16 %v290_v63, %v286_v62  ;;  %v289_v11 = vld [vmem:[#allocation3 + $0x170] sm:$0xff]  ;;  %v292_v12 = vld [vmem:[#allocation3 + $0x188] sm:$0xff]  ;;  %v294_v15 = vld [vmem:[#allocation3 + $0x198] sm:$0xff]  ;;  %v2730_v17 = vpack.c.bf16 %v287_v6, %v283_v4  ;;  %v102_v57 = vshrl.u32 %v101_v56, 7 }
  0x37   :  { %1887 = vmatpush1.bf16.msra.mxu0 %v2706_v52  ;;  %v296_v13 = vld [vmem:[#allocation3 + $0x1a8] sm:$0xff]  ;;  %v298_v16 = vld [vmem:[#allocation3 + $0x1b8] sm:$0xff]  ;;  %v291_v20 = vld [vmem:[#allocation3 + $0x180] sm:$0xff]  ;;  %v2734_v21 = vpack.c.bf16 %v289_v11, %v285_v7 }
  0x38   :  { %1919 = vmatpush1.bf16.msra.mxu1 %v2710_v53  ;;  %1889 = vmatprep.subr.bf16.mxu0 %v2712_v54  ;;  %v2736_v22 = vpack.c.bf16 %v296_v13, %v292_v12  ;;  %v295_v24 = vld [vmem:[#allocation3 + $0x1a0] sm:$0xff]  ;;  %v293_v25 = vld [vmem:[#allocation3 + $0x190] sm:$0xff]  ;;  %v2742_v29 = vpack.c.bf16 %v298_v16, %v294_v15  ;;  %v300_v31 = vld [vmem:[#allocation3 + $0x1c8] sm:$0xff]  ;;  %v103_v59 = vsub.s32 0, %v102_v57  ;;  %v107_v61 = vsub.s32 1, %v102_v57 }
  0x39   :  { %1921 = vmatprep.subr.bf16.mxu1 %v2715_v58  ;;  %v51_v26 = vld [vmem:[%s3148_s0] sm:$0xff]  ;;  %v297_v30 = vld [vmem:[#allocation3 + $0x1b0] sm:$0xff]  ;;  %v304_v33 = vld [vmem:[#allocation3 + $0x1e8] sm:$0xff]  ;;  %v2748_v38 = vpack.c.bf16 %v295_v24, %v291_v20  ;;  %v115_v7 = vsub.s32 3, %v102_v57  ;;  %v111_v20 = vsub.s32 2, %v102_v57 }
  0x3a   :  { %62 = vperm.xlu0 %2418, %v51_v26   ;;  %v302_v34 = vld [vmem:[#allocation3 + $0x1d8] sm:$0xff]  ;;  %v52_v37 = vld [vmem:[%s3148_s0 + $0x8] sm:$0xff]  ;;  %v2752_v39 = vpack.c.bf16 %v297_v30, %v293_v25  ;;  %v2754_v42 = vpack.c.bf16 %v304_v33, %v300_v31  ;;  %v299_v43 = vld [vmem:[#allocation3 + $0x1c0] sm:$0xff] }
  0x3b   :  { %1891 = vmatpush1.bf16.msra.mxu0 %v2718_v1  ;;  %v306_v35 = vld [vmem:[#allocation3 + $0x1f8] sm:$0xff]  ;;  %v303_v44 = vld [vmem:[#allocation3 + $0x1e0] sm:$0xff]  ;;  %v301_v47 = vld [vmem:[#allocation3 + $0x1d0] sm:$0xff] }
  0x3c   :  { %1923 = vmatpush1.bf16.msra.mxu1 %v2722_v2  ;;  %1893 = vmatprep.subr.bf16.mxu0 %v2724_v3  ;;  %v2757_v46 = vpack.c.bf16 %v306_v35, %v302_v34  ;;  %v305_v48 = vld [vmem:[#allocation3 + $0x1f0] sm:$0xff]  ;;  %v55_v49 = vld [vmem:[%s3148_s0 + $0x20] sm:$0xff]  ;;  %v2763_v50 = vpack.c.bf16 %v303_v44, %v299_v43 }
  0x3d   :  { %1925 = vmatprep.subr.bf16.mxu1 %v2727_v8  ;;  %v2767_v51 = vpack.c.bf16 %v305_v48, %v301_v47  ;;  %v57_v55 = vld [vmem:[%s3148_s0 + $0x30] sm:$0xff]  ;;  %v59_v60 = vld [vmem:[%s3149_s1] sm:$0xf] }
  0x3e   :  { %67 = vperm.xlu0 %2418, %v52_v37   ;;  %v2816_v62 = vrot.slane %v59_v60, %v103_v59  ;;  %v2818_v63 = vrot.slane %v59_v60, %v107_v61  ;;  %v153_v4 = vld [vmem:[%s3151_s3] sm:$0xf]  ;;  %v2829_v16 = vrot.slane %v59_v60, %v115_v7  ;;  %v2836_v33 = vrot.slane %v59_v60, %v111_v20 }
  0x3f   :  { %1895 = vmatpush1.bf16.msra.mxu0 %v2730_v17  ;;  %v2824_v12 = vrot.slane %v153_v4, %v103_v59  ;;  %v2827_v15 = vrot.slane %v153_v4, %v107_v61  ;;  %v2834_v31 = vrot.slane %v153_v4, %v115_v7  ;;  %v2840_v56 = vrot.slane %v153_v4, %v111_v20 }
  0x40   :  { %1927 = vmatpush1.bf16.msra.mxu1 %v2734_v21  ;;  %1897 = vmatprep.subr.bf16.mxu0 %v2736_v22 }
  0x41   :  { %1929 = vmatprep.subr.bf16.mxu1 %v2742_v29 }
  0x42   :  { %82 = vperm.xlu0 %2418, %v55_v49  }
  0x43   :  { %1899 = vmatpush1.bf16.msra.mxu0 %v2748_v38 }
  0x44   :  { %1931 = vmatpush1.bf16.msra.mxu1 %v2752_v39  ;;  %1901 = vmatprep.subr.bf16.mxu0 %v2754_v42 }
  0x45   :  { %1933 = vmatprep.subr.bf16.mxu1 %v2757_v46 }
  0x46   :  { %92 = vperm.xlu0 %2418, %v57_v55  }
  0x47   :  { %1903 = vmatpush1.bf16.msra.mxu0 %v2763_v50 }
  0x48   :  { %1935 = vmatpush1.bf16.msra.mxu1 %v2767_v51  ;;  %1937 = vmatprep.subr.bf16.mxu0 %v2667_v5 }
  0x49   :  { %1969 = vmatprep.subr.bf16.mxu1 %v2669_v9 }
  0x4a   :  { %372 = vmatmul.mubr.f32.vlgmr.msra.gmra.mrb[0].mxu0 %v2602_v0 }
  0x4b   :  { %443 = vmatmul.mubr.f32.vlgmr.msra.gmra.mrb[0].mxu1 %v2602_v0  ;;  %1939 = vmatpush1.bf16.msra.mxu0 %v2671_v10 }
  0x4c   :  { %1971 = vmatpush1.bf16.msra.mxu1 %v2674_v14  ;;  %1941 = vmatprep.subr.bf16.mxu0 %v2678_v18 }
  0x4d   :  { %1973 = vmatprep.subr.bf16.mxu1 %v2680_v19  ;;  %545 = vmatprep.mubr.f32.mxu0 %v2602_v0 }
  0x4e   :  { %616 = vmatprep.mubr.f32.mxu1 %v2602_v0 }
  0x4f   :  { %1943 = vmatpush1.bf16.msra.mxu0 %v2683_v23 }
  0x50   :  { %1975 = vmatpush1.bf16.msra.mxu1 %v2687_v27  ;;  %1945 = vmatprep.subr.bf16.mxu0 %v2689_v28 }
  0x51   :  { %1977 = vmatprep.subr.bf16.mxu1 %v2691_v32 }
  0x53   :  { %1947 = vmatpush1.bf16.msra.mxu0 %v2694_v36 }
  0x54   :  { %1979 = vmatpush1.bf16.msra.mxu1 %v2698_v40  ;;  %1949 = vmatprep.subr.bf16.mxu0 %v2700_v41 }
  0x55   :  { %1981 = vmatprep.subr.bf16.mxu1 %v2703_v45 }
  0x57   :  { %1951 = vmatpush1.bf16.msra.mxu0 %v2706_v52 }
  0x58   :  { %1983 = vmatpush1.bf16.msra.mxu1 %v2710_v53  ;;  %1953 = vmatprep.subr.bf16.mxu0 %v2712_v54 }
  0x59   :  { %1985 = vmatprep.subr.bf16.mxu1 %v2715_v58 }
  0x5b   :  { %1955 = vmatpush1.bf16.msra.mxu0 %v2718_v1 }
  0x5c   :  { %1987 = vmatpush1.bf16.msra.mxu1 %v2722_v2  ;;  %1957 = vmatprep.subr.bf16.mxu0 %v2724_v3 }
  0x5d   :  { %1989 = vmatprep.subr.bf16.mxu1 %v2727_v8 }
  0x5f   :  { %1959 = vmatpush1.bf16.msra.mxu0 %v2730_v17 }
  0x60   :  { %1991 = vmatpush1.bf16.msra.mxu1 %v2734_v21  ;;  %1961 = vmatprep.subr.bf16.mxu0 %v2736_v22 }
  0x61   :  { %1993 = vmatprep.subr.bf16.mxu1 %v2742_v29 }
  0x63   :  { %1963 = vmatpush1.bf16.msra.mxu0 %v2748_v38 }
  0x64   :  { %1995 = vmatpush1.bf16.msra.mxu1 %v2752_v39  ;;  %1965 = vmatprep.subr.bf16.mxu0 %v2754_v42 }
  0x65   :  { %1997 = vmatprep.subr.bf16.mxu1 %v2757_v46 }
  0x67   :  { %1967 = vmatpush1.bf16.msra.mxu0 %v2763_v50 }
  0x68   :  { %1999 = vmatpush1.bf16.msra.mxu1 %v2767_v51  ;;  %2001 = vmatprep.subr.bf16.mxu0 %v2667_v5 }
  0x69   :  { %2033 = vmatprep.subr.bf16.mxu1 %v2669_v9 }
  0xb9   :  { %v63_v6 = vpop.permute.xlu0 %62 }
  0xba   :  { %v121_v11 = vmul.f32 %v2816_v62, %v63_v6  ;;  %v122_v13 = vmul.f32 %v2818_v63, %v63_v6  ;;  %v124_v30 = vmul.f32 %v2829_v16, %v63_v6  ;;  %v123_v55 = vmul.f32 %v2836_v33, %v63_v6 }
  0xbc   :  { %v175_v24 = vadd.f32 %v2824_v12, %v121_v11  ;;  %v176_v25 = vadd.f32 %v2827_v15, %v122_v13  ;;  %v178_v49 = vadd.f32 %v2834_v31, %v124_v30  ;;  %v177_v59 = vadd.f32 %v2840_v56, %v123_v55  ;;  %v58_v55 = vld [vmem:[%s3148_s0 + $0x38] sm:$0xff] }
 0x11d   :  { %v373_v26 = vpop.f32.mrb[0].mxu0 }
 0x11e   :  { %v449_v34 = vadd.f32 %v373_v26, %v175_v24  ;;  %v444_v35 = vpop.f32.mrb[0].mxu1  ;;  %v375_v37 = vpop.f32.mrb[1].mxu0 }
 0x11f   :  { %v450_v43 = vadd.f32 %v375_v37, %v176_v25  ;;  %v446_v44 = vpop.f32.mrb[1].mxu1  ;;  %v451_v61 = vadd.f32 %v444_v35, %v177_v59 }
 0x120   :  { %v1795_v47 = vmul.f32 -1.442695, %v449_v34  ;;  %v452_v57 = vadd.f32 %v446_v44, %v178_v49  ;;  %v56_v49 = vld [vmem:[%s3148_s0 + $0x28] sm:$0xff] }
 0x121   :  { %v1796_v48 = vmul.f32 -1.442695, %v450_v43 }
 0x122   :  { %2420 = vpow2.f32 %v1795_v47  ;;  %v1797_v60 = vmul.f32 -1.442695, %v452_v57  ;;  %v53_v47 = vld [vmem:[%s3148_s0 + $0x10] sm:$0xff]  ;;  %v68_v57 = vpop.permute.xlu0 %67 }
 0x123   :  { %2422 = vpow2.f32 %v1796_v48  ;;  %72 = vperm.xlu1 %2419, %v53_v47   ;;  %v54_v48 = vld [vmem:[%s3148_s0 + $0x18] sm:$0xff]  ;;  %v125_v59 = vmul.f32 %v2816_v62, %v68_v57 }
 0x124   :  { %2424 = vpow2.f32 %v1797_v60  ;;  %v126_v60 = vmul.f32 %v2818_v63, %v68_v57 }
 0x125   :  { %2426 = vtanh.f32 %v451_v61  ;;  %v179_v61 = vadd.f32 %v2824_v12, %v125_v59 }
 0x127   :  { %77 = vperm.xlu1 %2419, %v54_v48  }
 0x12b   :  { %87 = vperm.xlu1 %2419, %v56_v49  }
 0x12c   :  { %v2421_v7 = vpop.eup %2420 }
 0x12d   :  { %v2423_v11 = vpop.eup %2422  ;;  %v456_v13 = vadd.f32 1.0, %v2421_v7 }
 0x12e   :  { %v462_v24 = vadd.f32 1.0, %v2423_v11  ;;  %v2425_v25 = vpop.eup %2424 }
 0x12f   :  { %2428 = vrcp.f32 %v456_v13  ;;  %v2427_v26 = vpop.eup %2426  ;;  %v469_v20 = vadd.f32 1.0, %v2425_v25  ;;  %97 = vperm.xlu1 %2419, %v58_v55   ;;  %v180_v13 = vadd.f32 %v2827_v15, %v126_v60 }
 0x130   :  { %2430 = vrcp.f32 %v462_v24 }
 0x131   :  { %2432 = vrcp.f32 %v469_v20 }
 0x139   :  { %v2429_v30 = vpop.eup %2428 }
 0x13a   :  { %v2431_v6 = vpop.eup %2430  ;;  %v473_v4 = vmul.f32 %v2429_v30, %v2427_v26 }
 0x13b   :  { %v472_v34 = vmul.f32 0.0, %v2431_v6  ;;  %v2433_v35 = vpop.eup %2432  ;;  %v128_v6 = vmul.f32 %v2829_v16, %v68_v57 }
 0x13d   :  { %v2843_v37 = vadd.f32 %v473_v4, %v472_v34  ;;  %v182_v34 = vadd.f32 %v2834_v31, %v128_v6 }
 0x13f   :  { %2434 = vtanh.f32 %v2843_v37 }
 0x149   :  { %v2435_v43 = vpop.eup %2434 }
 0x14a   :  { %v476_v44 = vmul.f32 %v2435_v43, %v2433_v35  ;;  %v127_v35 = vmul.f32 %v2836_v33, %v68_v57 }
 0x14c   :  { %546 = vmatmul.mubr.f32.vlgmr.msra.gmra.mrb[2].mxu0 %v476_v44  ;;  %617 = vmatmul.mubr.f32.vlgmr.msra.gmra.mrb[2].mxu1 %v476_v44  ;;  %v181_v44 = vadd.f32 %v2840_v56, %v127_v35 }
 0x14d   :  { %2003 = vmatpush1.bf16.msra.mxu0 %v2671_v10  ;;  %2035 = vmatpush1.bf16.msra.mxu1 %v2674_v14 }
 0x14e   :  { %2005 = vmatprep.subr.bf16.mxu0 %v2678_v18  ;;  %2037 = vmatprep.subr.bf16.mxu1 %v2680_v19 }
 0x14f   :  { %719 = vmatprep.mubr.f32.mxu0 %v2602_v0  ;;  %790 = vmatprep.mubr.f32.mxu1 %v2602_v0 }
 0x151   :  { %2007 = vmatpush1.bf16.msra.mxu0 %v2683_v23  ;;  %2039 = vmatpush1.bf16.msra.mxu1 %v2687_v27 }
 0x152   :  { %2009 = vmatprep.subr.bf16.mxu0 %v2689_v28  ;;  %2041 = vmatprep.subr.bf16.mxu1 %v2691_v32 }
 0x155   :  { %2011 = vmatpush1.bf16.msra.mxu0 %v2694_v36  ;;  %2043 = vmatpush1.bf16.msra.mxu1 %v2698_v40 }
 0x156   :  { %2013 = vmatprep.subr.bf16.mxu0 %v2700_v41  ;;  %2045 = vmatprep.subr.bf16.mxu1 %v2703_v45 }
 0x159   :  { %2015 = vmatpush1.bf16.msra.mxu0 %v2706_v52  ;;  %2047 = vmatpush1.bf16.msra.mxu1 %v2710_v53 }
 0x15a   :  { %2017 = vmatprep.subr.bf16.mxu0 %v2712_v54  ;;  %2049 = vmatprep.subr.bf16.mxu1 %v2715_v58 }
 0x15d   :  { %2019 = vmatpush1.bf16.msra.mxu0 %v2718_v1  ;;  %2051 = vmatpush1.bf16.msra.mxu1 %v2722_v2 }
 0x15e   :  { %2021 = vmatprep.subr.bf16.mxu0 %v2724_v3  ;;  %2053 = vmatprep.subr.bf16.mxu1 %v2727_v8 }
 0x161   :  { %2023 = vmatpush1.bf16.msra.mxu0 %v2730_v17  ;;  %2055 = vmatpush1.bf16.msra.mxu1 %v2734_v21 }
 0x162   :  { %2025 = vmatprep.subr.bf16.mxu0 %v2736_v22  ;;  %2057 = vmatprep.subr.bf16.mxu1 %v2742_v29 }
 0x165   :  { %2027 = vmatpush1.bf16.msra.mxu0 %v2748_v38  ;;  %2059 = vmatpush1.bf16.msra.mxu1 %v2752_v39 }
 0x166   :  { %2029 = vmatprep.subr.bf16.mxu0 %v2754_v42  ;;  %2061 = vmatprep.subr.bf16.mxu1 %v2757_v46 }
 0x169   :  { %2031 = vmatpush1.bf16.msra.mxu0 %v2763_v50  ;;  %2063 = vmatpush1.bf16.msra.mxu1 %v2767_v51 }
 0x16a   :  { %2065 = vmatprep.subr.bf16.mxu0 %v2667_v5  ;;  %2097 = vmatprep.subr.bf16.mxu1 %v2669_v9 }
 0x21f   :  { %v547_v7 = vpop.f32.mrb[2].mxu0  ;;  %v618_v11 = vpop.f32.mrb[2].mxu1 }
 0x220   :  { %v623_v24 = vadd.f32 %v547_v7, %v179_v61  ;;  %v549_v25 = vpop.f32.mrb[3].mxu0  ;;  %v620_v26 = vpop.f32.mrb[3].mxu1  ;;  %v625_v48 = vadd.f32 %v618_v11, %v181_v44 }
 0x221   :  { %v624_v30 = vadd.f32 %v549_v25, %v180_v13  ;;  %v626_v43 = vadd.f32 %v620_v26, %v182_v34 }
 0x222   :  { %v1798_v4 = vmul.f32 -1.442695, %v623_v24 }
 0x223   :  { %v1799_v20 = vmul.f32 -1.442695, %v624_v30  ;;  %v1800_v47 = vmul.f32 -1.442695, %v626_v43 }
 0x224   :  { %2436 = vpow2.f32 %v1798_v4 }
 0x225   :  { %2438 = vpow2.f32 %v1799_v20 }
 0x226   :  { %2440 = vpow2.f32 %v1800_v47 }
 0x227   :  { %2442 = vtanh.f32 %v625_v48 }
 0x22e   :  { %v2437_v49 = vpop.eup %2436 }
 0x22f   :  { %v2439_v55 = vpop.eup %2438  ;;  %v630_v59 = vadd.f32 1.0, %v2437_v49 }
 0x230   :  { %v636_v60 = vadd.f32 1.0, %v2439_v55  ;;  %v2441_v61 = vpop.eup %2440 }
 0x231   :  { %2444 = vrcp.f32 %v630_v59  ;;  %v2443_v7 = vpop.eup %2442  ;;  %v643_v30 = vadd.f32 1.0, %v2441_v61 }
 0x232   :  { %2446 = vrcp.f32 %v636_v60 }
 0x233   :  { %2448 = vrcp.f32 %v643_v30 }
 0x23b   :  { %v2445_v13 = vpop.eup %2444 }
 0x23c   :  { %v2447_v24 = vpop.eup %2446  ;;  %v647_v25 = vmul.f32 %v2445_v13, %v2443_v7 }
 0x23d   :  { %v646_v57 = vmul.f32 %v2447_v24, %v2843_v37  ;;  %v2449_v11 = vpop.eup %2448  ;;  %v73_v37 = vpop.permute.xlu1 %72 }
 0x23e   :  { %v129_v20 = vmul.f32 %v2816_v62, %v73_v37  ;;  %v130_v34 = vmul.f32 %v2818_v63, %v73_v37  ;;  %v132_v48 = vmul.f32 %v2829_v16, %v73_v37  ;;  %v131_v24 = vmul.f32 %v2836_v33, %v73_v37 }
 0x23f   :  { %v2901_v26 = vadd.f32 %v647_v25, %v646_v57 }
 0x240   :  { %v183_v35 = vadd.f32 %v2824_v12, %v129_v20  ;;  %v184_v43 = vadd.f32 %v2827_v15, %v130_v34  ;;  %v186_v13 = vadd.f32 %v2834_v31, %v132_v48  ;;  %v185_v30 = vadd.f32 %v2840_v56, %v131_v24 }
 0x241   :  { %2450 = vtanh.f32 %v2901_v26 }
 0x24b   :  { %v2451_v6 = vpop.eup %2450 }
 0x24c   :  { %v650_v4 = vmul.f32 %v2451_v6, %v2449_v11 }
 0x24e   :  { %720 = vmatmul.mubr.f32.vlgmr.msra.gmra.mrb[4].mxu0 %v650_v4  ;;  %791 = vmatmul.mubr.f32.vlgmr.msra.gmra.mrb[4].mxu1 %v650_v4 }
 0x24f   :  { %2067 = vmatpush1.bf16.msra.mxu0 %v2671_v10  ;;  %2099 = vmatpush1.bf16.msra.mxu1 %v2674_v14 }
 0x250   :  { %2069 = vmatprep.subr.bf16.mxu0 %v2678_v18  ;;  %2101 = vmatprep.subr.bf16.mxu1 %v2680_v19 }
 0x251   :  { %893 = vmatprep.mubr.f32.mxu0 %v2602_v0  ;;  %964 = vmatprep.mubr.f32.mxu1 %v2602_v0 }
 0x253   :  { %2071 = vmatpush1.bf16.msra.mxu0 %v2683_v23  ;;  %2103 = vmatpush1.bf16.msra.mxu1 %v2687_v27 }
 0x254   :  { %2073 = vmatprep.subr.bf16.mxu0 %v2689_v28  ;;  %2105 = vmatprep.subr.bf16.mxu1 %v2691_v32 }
 0x257   :  { %2075 = vmatpush1.bf16.msra.mxu0 %v2694_v36  ;;  %2107 = vmatpush1.bf16.msra.mxu1 %v2698_v40 }
 0x258   :  { %2077 = vmatprep.subr.bf16.mxu0 %v2700_v41  ;;  %2109 = vmatprep.subr.bf16.mxu1 %v2703_v45 }
 0x25b   :  { %2079 = vmatpush1.bf16.msra.mxu0 %v2706_v52  ;;  %2111 = vmatpush1.bf16.msra.mxu1 %v2710_v53 }
 0x25c   :  { %2081 = vmatprep.subr.bf16.mxu0 %v2712_v54  ;;  %2113 = vmatprep.subr.bf16.mxu1 %v2715_v58 }
 0x25f   :  { %2083 = vmatpush1.bf16.msra.mxu0 %v2718_v1  ;;  %2115 = vmatpush1.bf16.msra.mxu1 %v2722_v2 }
 0x260   :  { %2085 = vmatprep.subr.bf16.mxu0 %v2724_v3  ;;  %2117 = vmatprep.subr.bf16.mxu1 %v2727_v8 }
 0x263   :  { %2087 = vmatpush1.bf16.msra.mxu0 %v2730_v17  ;;  %2119 = vmatpush1.bf16.msra.mxu1 %v2734_v21 }
 0x264   :  { %2089 = vmatprep.subr.bf16.mxu0 %v2736_v22  ;;  %2121 = vmatprep.subr.bf16.mxu1 %v2742_v29 }
 0x267   :  { %2091 = vmatpush1.bf16.msra.mxu0 %v2748_v38  ;;  %2123 = vmatpush1.bf16.msra.mxu1 %v2752_v39 }
 0x268   :  { %2093 = vmatprep.subr.bf16.mxu0 %v2754_v42  ;;  %2125 = vmatprep.subr.bf16.mxu1 %v2757_v46 }
 0x26b   :  { %2095 = vmatpush1.bf16.msra.mxu0 %v2763_v50  ;;  %2127 = vmatpush1.bf16.msra.mxu1 %v2767_v51 }
 0x26c   :  { %2129 = vmatprep.subr.bf16.mxu0 %v2667_v5  ;;  %2161 = vmatprep.subr.bf16.mxu1 %v2669_v9 }
 0x321   :  { %v721_v44 = vpop.f32.mrb[4].mxu0  ;;  %v792_v47 = vpop.f32.mrb[4].mxu1 }
 0x322   :  { %v797_v49 = vadd.f32 %v721_v44, %v183_v35  ;;  %v723_v55 = vpop.f32.mrb[5].mxu0  ;;  %v794_v59 = vpop.f32.mrb[5].mxu1  ;;  %v799_v11 = vadd.f32 %v792_v47, %v185_v30 }
 0x323   :  { %v798_v60 = vadd.f32 %v723_v55, %v184_v43  ;;  %v800_v25 = vadd.f32 %v794_v59, %v186_v13 }
 0x324   :  { %v1801_v61 = vmul.f32 -1.442695, %v797_v49 }
 0x325   :  { %v1802_v7 = vmul.f32 -1.442695, %v798_v60  ;;  %v1803_v57 = vmul.f32 -1.442695, %v800_v25 }
 0x326   :  { %2452 = vpow2.f32 %v1801_v61 }
 0x327   :  { %2454 = vpow2.f32 %v1802_v7 }
 0x328   :  { %2456 = vpow2.f32 %v1803_v57 }
 0x329   :  { %2458 = vtanh.f32 %v799_v11 }
 0x330   :  { %v2453_v6 = vpop.eup %2452 }
 0x331   :  { %v2455_v4 = vpop.eup %2454  ;;  %v804_v20 = vadd.f32 1.0, %v2453_v6 }
 0x332   :  { %v810_v34 = vadd.f32 1.0, %v2455_v4  ;;  %v2457_v35 = vpop.eup %2456 }
 0x333   :  { %2460 = vrcp.f32 %v804_v20  ;;  %v2459_v43 = vpop.eup %2458  ;;  %v817_v37 = vadd.f32 1.0, %v2457_v35 }
 0x334   :  { %2462 = vrcp.f32 %v810_v34 }
 0x335   :  { %2464 = vrcp.f32 %v817_v37 }
 0x33d   :  { %v2461_v44 = vpop.eup %2460 }
 0x33e   :  { %v2463_v48 = vpop.eup %2462  ;;  %v821_v49 = vmul.f32 %v2461_v44, %v2459_v43 }
 0x33f   :  { %v820_v55 = vmul.f32 %v2463_v48, %v2901_v26  ;;  %v2465_v47 = vpop.eup %2464  ;;  %v78_v26 = vpop.permute.xlu1 %77 }
 0x340   :  { %v133_v7 = vmul.f32 %v2816_v62, %v78_v26  ;;  %v134_v13 = vmul.f32 %v2818_v63, %v78_v26  ;;  %v136_v34 = vmul.f32 %v2829_v16, %v78_v26  ;;  %v135_v48 = vmul.f32 %v2836_v33, %v78_v26 }
 0x341   :  { %v2947_v59 = vadd.f32 %v821_v49, %v820_v55 }
 0x342   :  { %v187_v24 = vadd.f32 %v2824_v12, %v133_v7  ;;  %v188_v57 = vadd.f32 %v2827_v15, %v134_v13  ;;  %v190_v44 = vadd.f32 %v2834_v31, %v136_v34  ;;  %v189_v37 = vadd.f32 %v2840_v56, %v135_v48 }
 0x343   :  { %2466 = vtanh.f32 %v2947_v59 }
 0x34d   :  { %v2467_v60 = vpop.eup %2466 }
 0x34e   :  { %v824_v61 = vmul.f32 %v2467_v60, %v2465_v47 }
 0x350   :  { %894 = vmatmul.mubr.f32.vlgmr.msra.gmra.mrb[6].mxu0 %v824_v61  ;;  %965 = vmatmul.mubr.f32.vlgmr.msra.gmra.mrb[6].mxu1 %v824_v61 }
 0x351   :  { %2131 = vmatpush1.bf16.msra.mxu0 %v2671_v10  ;;  %2163 = vmatpush1.bf16.msra.mxu1 %v2674_v14 }
 0x352   :  { %2133 = vmatprep.subr.bf16.mxu0 %v2678_v18  ;;  %2165 = vmatprep.subr.bf16.mxu1 %v2680_v19 }
 0x353   :  { %1067 = vmatprep.mubr.f32.mxu0 %v2602_v0  ;;  %1138 = vmatprep.mubr.f32.mxu1 %v2602_v0 }
 0x355   :  { %2135 = vmatpush1.bf16.msra.mxu0 %v2683_v23  ;;  %2167 = vmatpush1.bf16.msra.mxu1 %v2687_v27 }
 0x356   :  { %2137 = vmatprep.subr.bf16.mxu0 %v2689_v28  ;;  %2169 = vmatprep.subr.bf16.mxu1 %v2691_v32 }
 0x359   :  { %2139 = vmatpush1.bf16.msra.mxu0 %v2694_v36  ;;  %2171 = vmatpush1.bf16.msra.mxu1 %v2698_v40 }
 0x35a   :  { %2141 = vmatprep.subr.bf16.mxu0 %v2700_v41  ;;  %2173 = vmatprep.subr.bf16.mxu1 %v2703_v45 }
 0x35d   :  { %2143 = vmatpush1.bf16.msra.mxu0 %v2706_v52  ;;  %2175 = vmatpush1.bf16.msra.mxu1 %v2710_v53 }
 0x35e   :  { %2145 = vmatprep.subr.bf16.mxu0 %v2712_v54  ;;  %2177 = vmatprep.subr.bf16.mxu1 %v2715_v58 }
 0x361   :  { %2147 = vmatpush1.bf16.msra.mxu0 %v2718_v1  ;;  %2179 = vmatpush1.bf16.msra.mxu1 %v2722_v2 }
 0x362   :  { %2149 = vmatprep.subr.bf16.mxu0 %v2724_v3  ;;  %2181 = vmatprep.subr.bf16.mxu1 %v2727_v8 }
 0x365   :  { %2151 = vmatpush1.bf16.msra.mxu0 %v2730_v17  ;;  %2183 = vmatpush1.bf16.msra.mxu1 %v2734_v21 }
 0x366   :  { %2153 = vmatprep.subr.bf16.mxu0 %v2736_v22  ;;  %2185 = vmatprep.subr.bf16.mxu1 %v2742_v29 }
 0x369   :  { %2155 = vmatpush1.bf16.msra.mxu0 %v2748_v38  ;;  %2187 = vmatpush1.bf16.msra.mxu1 %v2752_v39 }
 0x36a   :  { %2157 = vmatprep.subr.bf16.mxu0 %v2754_v42  ;;  %2189 = vmatprep.subr.bf16.mxu1 %v2757_v46 }
 0x36d   :  { %2159 = vmatpush1.bf16.msra.mxu0 %v2763_v50  ;;  %2191 = vmatpush1.bf16.msra.mxu1 %v2767_v51 }
 0x36e   :  { %2193 = vmatprep.subr.bf16.mxu0 %v2667_v5  ;;  %2225 = vmatprep.subr.bf16.mxu1 %v2669_v9 }
 0x423   :  { %v895_v25 = vpop.f32.mrb[6].mxu0  ;;  %v966_v30 = vpop.f32.mrb[6].mxu1 }
 0x424   :  { %v971_v11 = vadd.f32 %v895_v25, %v187_v24  ;;  %v897_v6 = vpop.f32.mrb[7].mxu0  ;;  %v968_v4 = vpop.f32.mrb[7].mxu1  ;;  %v973_v47 = vadd.f32 %v966_v30, %v189_v37 }
 0x425   :  { %v972_v20 = vadd.f32 %v897_v6, %v188_v57  ;;  %v974_v49 = vadd.f32 %v968_v4, %v190_v44 }
 0x426   :  { %v1804_v35 = vmul.f32 -1.442695, %v971_v11 }
 0x427   :  { %v1805_v43 = vmul.f32 -1.442695, %v972_v20  ;;  %v1806_v55 = vmul.f32 -1.442695, %v974_v49 }
 0x428   :  { %2468 = vpow2.f32 %v1804_v35 }
 0x429   :  { %2470 = vpow2.f32 %v1805_v43 }
 0x42a   :  { %2472 = vpow2.f32 %v1806_v55 }
 0x42b   :  { %2474 = vtanh.f32 %v973_v47 }
 0x432   :  { %v2469_v60 = vpop.eup %2468 }
 0x433   :  { %v2471_v61 = vpop.eup %2470  ;;  %v978_v7 = vadd.f32 1.0, %v2469_v60 }
 0x434   :  { %v984_v13 = vadd.f32 1.0, %v2471_v61  ;;  %v2473_v24 = vpop.eup %2472 }
 0x435   :  { %2476 = vrcp.f32 %v978_v7  ;;  %v2475_v25 = vpop.eup %2474  ;;  %v991_v20 = vadd.f32 1.0, %v2473_v24 }
 0x436   :  { %2478 = vrcp.f32 %v984_v13 }
 0x437   :  { %2480 = vrcp.f32 %v991_v20 }
 0x43f   :  { %v2477_v57 = vpop.eup %2476 }
 0x440   :  { %v2479_v11 = vpop.eup %2478  ;;  %v995_v6 = vmul.f32 %v2477_v57, %v2475_v25 }
 0x441   :  { %v994_v26 = vmul.f32 %v2479_v11, %v2947_v59  ;;  %v2481_v30 = vpop.eup %2480  ;;  %v83_v59 = vpop.permute.xlu0 %82 }
 0x442   :  { %v137_v43 = vmul.f32 %v2816_v62, %v83_v59  ;;  %v138_v44 = vmul.f32 %v2818_v63, %v83_v59  ;;  %v140_v13 = vmul.f32 %v2829_v16, %v83_v59  ;;  %v139_v11 = vmul.f32 %v2836_v33, %v83_v59 }
 0x443   :  { %v2993_v4 = vadd.f32 %v995_v6, %v994_v26 }
 0x444   :  { %v191_v48 = vadd.f32 %v2824_v12, %v137_v43  ;;  %v192_v55 = vadd.f32 %v2827_v15, %v138_v44  ;;  %v194_v57 = vadd.f32 %v2834_v31, %v140_v13  ;;  %v193_v20 = vadd.f32 %v2840_v56, %v139_v11 }
 0x445   :  { %2482 = vtanh.f32 %v2993_v4 }
 0x44f   :  { %v2483_v34 = vpop.eup %2482 }
 0x450   :  { %v998_v35 = vmul.f32 %v2483_v34, %v2481_v30 }
 0x452   :  { %1068 = vmatmul.mubr.f32.vlgmr.msra.gmra.mrb[8].mxu0 %v998_v35  ;;  %1139 = vmatmul.mubr.f32.vlgmr.msra.gmra.mrb[8].mxu1 %v998_v35 }
 0x453   :  { %2195 = vmatpush1.bf16.msra.mxu0 %v2671_v10  ;;  %2227 = vmatpush1.bf16.msra.mxu1 %v2674_v14 }
 0x454   :  { %2197 = vmatprep.subr.bf16.mxu0 %v2678_v18  ;;  %2229 = vmatprep.subr.bf16.mxu1 %v2680_v19 }
 0x455   :  { %1241 = vmatprep.mubr.f32.mxu0 %v2602_v0  ;;  %1312 = vmatprep.mubr.f32.mxu1 %v2602_v0 }
 0x457   :  { %2199 = vmatpush1.bf16.msra.mxu0 %v2683_v23  ;;  %2231 = vmatpush1.bf16.msra.mxu1 %v2687_v27 }
 0x458   :  { %2201 = vmatprep.subr.bf16.mxu0 %v2689_v28  ;;  %2233 = vmatprep.subr.bf16.mxu1 %v2691_v32 }
 0x45b   :  { %2203 = vmatpush1.bf16.msra.mxu0 %v2694_v36  ;;  %2235 = vmatpush1.bf16.msra.mxu1 %v2698_v40 }
 0x45c   :  { %2205 = vmatprep.subr.bf16.mxu0 %v2700_v41  ;;  %2237 = vmatprep.subr.bf16.mxu1 %v2703_v45 }
 0x45f   :  { %2207 = vmatpush1.bf16.msra.mxu0 %v2706_v52  ;;  %2239 = vmatpush1.bf16.msra.mxu1 %v2710_v53 }
 0x460   :  { %2209 = vmatprep.subr.bf16.mxu0 %v2712_v54  ;;  %2241 = vmatprep.subr.bf16.mxu1 %v2715_v58 }
 0x463   :  { %2211 = vmatpush1.bf16.msra.mxu0 %v2718_v1  ;;  %2243 = vmatpush1.bf16.msra.mxu1 %v2722_v2 }
 0x464   :  { %2213 = vmatprep.subr.bf16.mxu0 %v2724_v3  ;;  %2245 = vmatprep.subr.bf16.mxu1 %v2727_v8 }
 0x467   :  { %2215 = vmatpush1.bf16.msra.mxu0 %v2730_v17  ;;  %2247 = vmatpush1.bf16.msra.mxu1 %v2734_v21 }
 0x468   :  { %2217 = vmatprep.subr.bf16.mxu0 %v2736_v22  ;;  %2249 = vmatprep.subr.bf16.mxu1 %v2742_v29 }
 0x46b   :  { %2219 = vmatpush1.bf16.msra.mxu0 %v2748_v38  ;;  %2251 = vmatpush1.bf16.msra.mxu1 %v2752_v39 }
 0x46c   :  { %2221 = vmatprep.subr.bf16.mxu0 %v2754_v42  ;;  %2253 = vmatprep.subr.bf16.mxu1 %v2757_v46 }
 0x46f   :  { %2223 = vmatpush1.bf16.msra.mxu0 %v2763_v50  ;;  %2255 = vmatpush1.bf16.msra.mxu1 %v2767_v51 }
 0x470   :  { %2257 = vmatprep.subr.bf16.mxu0 %v2667_v5  ;;  %2289 = vmatprep.subr.bf16.mxu1 %v2669_v9 }
 0x525   :  { %v1069_v49 = vpop.f32.mrb[8].mxu0  ;;  %v1140_v37 = vpop.f32.mrb[8].mxu1 }
 0x526   :  { %v1145_v47 = vadd.f32 %v1069_v49, %v191_v48  ;;  %v1071_v60 = vpop.f32.mrb[9].mxu0  ;;  %v1142_v61 = vpop.f32.mrb[9].mxu1  ;;  %v1147_v30 = vadd.f32 %v1140_v37, %v193_v20 }
 0x527   :  { %v1146_v7 = vadd.f32 %v1071_v60, %v192_v55  ;;  %v1148_v6 = vadd.f32 %v1142_v61, %v194_v57 }
 0x528   :  { %v1807_v24 = vmul.f32 -1.442695, %v1145_v47 }
 0x529   :  { %v1808_v25 = vmul.f32 -1.442695, %v1146_v7  ;;  %v1809_v26 = vmul.f32 -1.442695, %v1148_v6 }
 0x52a   :  { %2484 = vpow2.f32 %v1807_v24 }
 0x52b   :  { %2486 = vpow2.f32 %v1808_v25 }
 0x52c   :  { %2488 = vpow2.f32 %v1809_v26 }
 0x52d   :  { %2490 = vtanh.f32 %v1147_v30 }
 0x534   :  { %v2485_v34 = vpop.eup %2484 }
 0x535   :  { %v2487_v35 = vpop.eup %2486  ;;  %v1152_v43 = vadd.f32 1.0, %v2485_v34 }
 0x536   :  { %v1158_v44 = vadd.f32 1.0, %v2487_v35  ;;  %v2489_v48 = vpop.eup %2488 }
 0x537   :  { %2492 = vrcp.f32 %v1152_v43  ;;  %v2491_v49 = vpop.eup %2490  ;;  %v1165_v7 = vadd.f32 1.0, %v2489_v48 }
 0x538   :  { %2494 = vrcp.f32 %v1158_v44 }
 0x539   :  { %2496 = vrcp.f32 %v1165_v7 }
 0x541   :  { %v2493_v55 = vpop.eup %2492 }
 0x542   :  { %v2495_v47 = vpop.eup %2494  ;;  %v1169_v60 = vmul.f32 %v2493_v55, %v2491_v49 }
 0x543   :  { %v1168_v59 = vmul.f32 %v2495_v47, %v2993_v4  ;;  %v2497_v37 = vpop.eup %2496  ;;  %v88_v4 = vpop.permute.xlu1 %87 }
 0x544   :  { %v141_v25 = vmul.f32 %v2816_v62, %v88_v4  ;;  %v142_v57 = vmul.f32 %v2818_v63, %v88_v4  ;;  %v144_v44 = vmul.f32 %v2829_v16, %v88_v4  ;;  %v143_v49 = vmul.f32 %v2836_v33, %v88_v4 }
 0x545   :  { %v3039_v61 = vadd.f32 %v1169_v60, %v1168_v59 }
 0x546   :  { %v195_v11 = vadd.f32 %v2824_v12, %v141_v25  ;;  %v196_v26 = vadd.f32 %v2827_v15, %v142_v57  ;;  %v197_v47 = vadd.f32 %v2840_v56, %v143_v49  ;;  %v1695_v49 = vld [vmem:[#allocation5] sm:$0xff] }
 0x547   :  { %2498 = vtanh.f32 %v3039_v61 }
 0x551   :  { %v2499_v13 = vpop.eup %2498 }
 0x552   :  { %v1172_v24 = vmul.f32 %v2499_v13, %v2497_v37 }
 0x554   :  { %1242 = vmatmul.mubr.f32.vlgmr.msra.gmra.mrb[10].mxu0 %v1172_v24  ;;  %1313 = vmatmul.mubr.f32.vlgmr.msra.gmra.mrb[10].mxu1 %v1172_v24 }
 0x555   :  { %2259 = vmatpush1.bf16.msra.mxu0 %v2671_v10  ;;  %2291 = vmatpush1.bf16.msra.mxu1 %v2674_v14 }
 0x556   :  { %2261 = vmatprep.subr.bf16.mxu0 %v2678_v18  ;;  %2293 = vmatprep.subr.bf16.mxu1 %v2680_v19 }
 0x557   :  { %1415 = vmatprep.mubr.f32.mxu0 %v2602_v0  ;;  %1486 = vmatprep.mubr.f32.mxu1 %v2602_v0 }
 0x559   :  { %2263 = vmatpush1.bf16.msra.mxu0 %v2683_v23  ;;  %2295 = vmatpush1.bf16.msra.mxu1 %v2687_v27 }
 0x55a   :  { %2265 = vmatprep.subr.bf16.mxu0 %v2689_v28  ;;  %2297 = vmatprep.subr.bf16.mxu1 %v2691_v32 }
 0x55d   :  { %2267 = vmatpush1.bf16.msra.mxu0 %v2694_v36  ;;  %2299 = vmatpush1.bf16.msra.mxu1 %v2698_v40 }
 0x55e   :  { %2269 = vmatprep.subr.bf16.mxu0 %v2700_v41  ;;  %2301 = vmatprep.subr.bf16.mxu1 %v2703_v45 }
 0x561   :  { %2271 = vmatpush1.bf16.msra.mxu0 %v2706_v52  ;;  %2303 = vmatpush1.bf16.msra.mxu1 %v2710_v53 }
 0x562   :  { %2273 = vmatprep.subr.bf16.mxu0 %v2712_v54  ;;  %2305 = vmatprep.subr.bf16.mxu1 %v2715_v58 }
 0x565   :  { %2275 = vmatpush1.bf16.msra.mxu0 %v2718_v1  ;;  %2307 = vmatpush1.bf16.msra.mxu1 %v2722_v2 }
 0x566   :  { %2277 = vmatprep.subr.bf16.mxu0 %v2724_v3  ;;  %2309 = vmatprep.subr.bf16.mxu1 %v2727_v8 }
 0x569   :  { %2279 = vmatpush1.bf16.msra.mxu0 %v2730_v17  ;;  %2311 = vmatpush1.bf16.msra.mxu1 %v2734_v21 }
 0x56a   :  { %2281 = vmatprep.subr.bf16.mxu0 %v2736_v22  ;;  %2313 = vmatprep.subr.bf16.mxu1 %v2742_v29 }
 0x56d   :  { %2283 = vmatpush1.bf16.msra.mxu0 %v2748_v38  ;;  %2315 = vmatpush1.bf16.msra.mxu1 %v2752_v39 }
 0x56e   :  { %2285 = vmatprep.subr.bf16.mxu0 %v2754_v42  ;;  %2317 = vmatprep.subr.bf16.mxu1 %v2757_v46 }
 0x571   :  { %2287 = vmatpush1.bf16.msra.mxu0 %v2763_v50  ;;  %2319 = vmatpush1.bf16.msra.mxu1 %v2767_v51 }
 0x572   :  { %2321 = vmatprep.subr.bf16.mxu0 %v2667_v5  ;;  %2353 = vmatprep.subr.bf16.mxu1 %v2669_v9  ;;  %v198_v9 = vadd.f32 %v2834_v31, %v144_v44 }
 0x627   :  { %v1243_v6 = vpop.f32.mrb[10].mxu0  ;;  %v1314_v20 = vpop.f32.mrb[10].mxu1 }
 0x628   :  { %v1319_v30 = vadd.f32 %v1243_v6, %v195_v11  ;;  %v1245_v34 = vpop.f32.mrb[11].mxu0  ;;  %v1316_v35 = vpop.f32.mrb[11].mxu1  ;;  %v1321_v7 = vadd.f32 %v1314_v20, %v197_v47 }
 0x629   :  { %v1320_v43 = vadd.f32 %v1245_v34, %v196_v26  ;;  %v1322_v55 = vadd.f32 %v1316_v35, %v198_v9 }
 0x62a   :  { %v1810_v5 = vmul.f32 -1.442695, %v1319_v30 }
 0x62b   :  { %v1811_v48 = vmul.f32 -1.442695, %v1320_v43  ;;  %v1812_v60 = vmul.f32 -1.442695, %v1322_v55  ;;  %v1696_v55 = vld [vmem:[#allocation5 + $0x8] sm:$0xff] }
 0x62c   :  { %2500 = vpow2.f32 %v1810_v5  ;;  %v2385_v47 = vpack.c.bf16 %v1696_v55, %v1695_v49 }
 0x62d   :  { %2502 = vpow2.f32 %v1811_v48 }
 0x62e   :  { %2504 = vpow2.f32 %v1812_v60  ;;  %v2604_v60 = vmov 0.0|0.0  }
 0x62f   :  { %2506 = vtanh.f32 %v1321_v7  ;;  %v1697_v7 = vld [vmem:[#allocation5 + $0x10] sm:$0xff] }
 0x636   :  { %v2501_v59 = vpop.eup %2500 }
 0x637   :  { %v2503_v37 = vpop.eup %2502  ;;  %v1326_v13 = vadd.f32 1.0, %v2501_v59  ;;  %v1698_v59 = vld [vmem:[#allocation5 + $0x18] sm:$0xff] }
 0x638   :  { %v1332_v24 = vadd.f32 1.0, %v2503_v37  ;;  %v2505_v25 = vpop.eup %2504  ;;  %v2388_v37 = vpack.c.bf16 %v1698_v59, %v1697_v7 }
 0x639   :  { %2508 = vrcp.f32 %v1326_v13  ;;  %v2507_v57 = vpop.eup %2506  ;;  %v1339_v30 = vadd.f32 1.0, %v2505_v25  ;;  %v1699_v13 = vld [vmem:[#allocation5 + $0x20] sm:$0xff] }
 0x63a   :  { %2510 = vrcp.f32 %v1332_v24  ;;  %v1700_v24 = vld [vmem:[#allocation5 + $0x28] sm:$0xff] }
 0x63b   :  { %2512 = vrcp.f32 %v1339_v30  ;;  %v2391_v25 = vpack.c.bf16 %v1700_v24, %v1699_v13  ;;  %v1704_v30 = vld [vmem:[#allocation5 + $0x48] sm:$0xff] }
 0x643   :  { %v2509_v11 = vpop.eup %2508 }
 0x644   :  { %v2511_v6 = vpop.eup %2510  ;;  %v1343_v26 = vmul.f32 %v2509_v11, %v2507_v57  ;;  %v1701_v57 = vld [vmem:[#allocation5 + $0x30] sm:$0xff]  ;;  %v1702_v11 = vld [vmem:[#allocation5 + $0x38] sm:$0xff] }
 0x645   :  { %v1342_v4 = vmul.f32 %v2511_v6, %v3039_v61  ;;  %v2513_v20 = vpop.eup %2512  ;;  %v2394_v6 = vpack.c.bf16 %v1702_v11, %v1701_v57 }
 0x647   :  { %v3085_v34 = vadd.f32 %v1343_v26, %v1342_v4  ;;  %v1703_v26 = vld [vmem:[#allocation5 + $0x40] sm:$0xff] }
 0x648   :  { %v2397_v4 = vpack.c.bf16 %v1704_v30, %v1703_v26 }
 0x649   :  { %2514 = vtanh.f32 %v3085_v34 }
 0x653   :  { %v2515_v35 = vpop.eup %2514 }
 0x654   :  { %v1346_v43 = vmul.f32 %v2515_v35, %v2513_v20  ;;  %v1706_v20 = vld [vmem:[#allocation5 + $0x58] sm:$0xff]  ;;  %v1707_v35 = vld [vmem:[#allocation5 + $0x60] sm:$0xff] }
 0x656   :  { %1416 = vmatmul.mubr.f32.vlgmr.msra.gmra.mrb[12].mxu0 %v1346_v43  ;;  %1487 = vmatmul.mubr.f32.vlgmr.msra.gmra.mrb[12].mxu1 %v1346_v43 }
 0x657   :  { %2323 = vmatpush1.bf16.msra.mxu0 %v2671_v10  ;;  %2355 = vmatpush1.bf16.msra.mxu1 %v2674_v14  ;;  %v93_v10 = vpop.permute.xlu0 %92 }
 0x658   :  { %2325 = vmatprep.subr.bf16.mxu0 %v2678_v18  ;;  %2357 = vmatprep.subr.bf16.mxu1 %v2680_v19  ;;  %v145_v14 = vmul.f32 %v2816_v62, %v93_v10  ;;  %v146_v18 = vmul.f32 %v2818_v63, %v93_v10 }
 0x659   :  { %1589 = vmatprep.mubr.f32.mxu0 %v2602_v0  ;;  %1660 = vmatprep.mubr.f32.mxu1 %v2602_v0 }
 0x65a   :  { %v199_v19 = vadd.f32 %v2824_v12, %v145_v14 }
 0x65b   :  { %2327 = vmatpush1.bf16.msra.mxu0 %v2683_v23  ;;  %2359 = vmatpush1.bf16.msra.mxu1 %v2687_v27 }
 0x65c   :  { %2329 = vmatprep.subr.bf16.mxu0 %v2689_v28  ;;  %2361 = vmatprep.subr.bf16.mxu1 %v2691_v32  ;;  %v200_v28 = vadd.f32 %v2827_v15, %v146_v18  ;;  %v1709_v18 = vld [vmem:[#allocation5 + $0x70] sm:$0xff] }
 0x65f   :  { %2331 = vmatpush1.bf16.msra.mxu0 %v2694_v36  ;;  %2363 = vmatpush1.bf16.msra.mxu1 %v2698_v40 }
 0x660   :  { %2333 = vmatprep.subr.bf16.mxu0 %v2700_v41  ;;  %2365 = vmatprep.subr.bf16.mxu1 %v2703_v45  ;;  %v148_v41 = vmul.f32 %v2829_v16, %v93_v10 }
 0x663   :  { %2335 = vmatpush1.bf16.msra.mxu0 %v2706_v52  ;;  %2367 = vmatpush1.bf16.msra.mxu1 %v2710_v53 }
 0x664   :  { %2337 = vmatprep.subr.bf16.mxu0 %v2712_v54  ;;  %2369 = vmatprep.subr.bf16.mxu1 %v2715_v58  ;;  %v202_v54 = vadd.f32 %v2834_v31, %v148_v41  ;;  %v147_v58 = vmul.f32 %v2836_v33, %v93_v10  ;;  %v1708_v10 = vld [vmem:[#allocation5 + $0x68] sm:$0xff] }
 0x665   :  { %v2403_v14 = vpack.c.bf16 %v1708_v10, %v1707_v35 }
 0x667   :  { %2339 = vmatpush1.bf16.msra.mxu0 %v2718_v1  ;;  %2371 = vmatpush1.bf16.msra.mxu1 %v2722_v2  ;;  %v201_v2 = vadd.f32 %v2840_v56, %v147_v58 }
 0x668   :  { %2341 = vmatprep.subr.bf16.mxu0 %v2724_v3  ;;  %2373 = vmatprep.subr.bf16.mxu1 %v2727_v8 }
 0x66b   :  { %2343 = vmatpush1.bf16.msra.mxu0 %v2730_v17  ;;  %2375 = vmatpush1.bf16.msra.mxu1 %v2734_v21 }
 0x66c   :  { %2345 = vmatprep.subr.bf16.mxu0 %v2736_v22  ;;  %2377 = vmatprep.subr.bf16.mxu1 %v2742_v29 }
 0x66f   :  { %2347 = vmatpush1.bf16.msra.mxu0 %v2748_v38  ;;  %2379 = vmatpush1.bf16.msra.mxu1 %v2752_v39 }
 0x670   :  { %2349 = vmatprep.subr.bf16.mxu0 %v2754_v42  ;;  %2381 = vmatprep.subr.bf16.mxu1 %v2757_v46 }
 0x673   :  { %2351 = vmatpush1.bf16.msra.mxu0 %v2763_v50  ;;  %2383 = vmatpush1.bf16.msra.mxu1 %v2767_v51 }
 0x674   :  { %2384 = vmatprep.subr.bf16.mxu0 %v2604_v60 }
 0x729   :  { %v1417_v23 = vpop.f32.mrb[12].mxu0  ;;  %v1488_v27 = vpop.f32.mrb[12].mxu1 }
 0x72a   :  { %v1493_v32 = vadd.f32 %v1417_v23, %v199_v19  ;;  %v1419_v36 = vpop.f32.mrb[13].mxu0  ;;  %v1490_v40 = vpop.f32.mrb[13].mxu1  ;;  %v1495_v8 = vadd.f32 %v1488_v27, %v201_v2  ;;  %v1710_v19 = vld [vmem:[#allocation5 + $0x78] sm:$0xff] }
 0x72b   :  { %v1494_v45 = vadd.f32 %v1419_v36, %v200_v28  ;;  %v1496_v1 = vadd.f32 %v1490_v40, %v202_v54  ;;  %v2406_v23 = vpack.c.bf16 %v1710_v19, %v1709_v18  ;;  %v98_v27 = vpop.permute.xlu1 %97 }
 0x72c   :  { %v1813_v52 = vmul.f32 -1.442695, %v1493_v32  ;;  %v149_v28 = vmul.f32 %v2816_v62, %v98_v27  ;;  %v150_v32 = vmul.f32 %v2818_v63, %v98_v27  ;;  %v152_v54 = vmul.f32 %v2829_v16, %v98_v27 }
 0x72d   :  { %v1814_v53 = vmul.f32 -1.442695, %v1494_v45  ;;  %v1815_v3 = vmul.f32 -1.442695, %v1496_v1  ;;  %v151_v63 = vmul.f32 %v2836_v33, %v98_v27 }
 0x72e   :  { %2516 = vpow2.f32 %v1813_v52  ;;  %v203_v36 = vadd.f32 %v2824_v12, %v149_v28  ;;  %v206_v62 = vadd.f32 %v2834_v31, %v152_v54 }
 0x72f   :  { %2518 = vpow2.f32 %v1814_v53  ;;  %v205_v12 = vadd.f32 %v2840_v56, %v151_v63 }
 0x730   :  { %2520 = vpow2.f32 %v1815_v3 }
 0x731   :  { %2522 = vtanh.f32 %v1495_v8 }
 0x738   :  { %v2517_v17 = vpop.eup %2516 }
 0x739   :  { %v2519_v21 = vpop.eup %2518  ;;  %v1500_v22 = vadd.f32 1.0, %v2517_v17 }
 0x73a   :  { %v1506_v29 = vadd.f32 1.0, %v2519_v21  ;;  %v2521_v38 = vpop.eup %2520 }
 0x73b   :  { %2524 = vrcp.f32 %v1500_v22  ;;  %v2523_v39 = vpop.eup %2522  ;;  %v1513_v51 = vadd.f32 1.0, %v2521_v38 }
 0x73c   :  { %2526 = vrcp.f32 %v1506_v29 }
 0x73d   :  { %2528 = vrcp.f32 %v1513_v51 }
 0x745   :  { %v2525_v42 = vpop.eup %2524 }
 0x746   :  { %v2527_v46 = vpop.eup %2526  ;;  %v1517_v50 = vmul.f32 %v2525_v42, %v2523_v39 }
 0x747   :  { %v1516_v61 = vmul.f32 %v2527_v46, %v3085_v34  ;;  %v2529_v5 = vpop.eup %2528  ;;  %v1705_v34 = vld [vmem:[#allocation5 + $0x50] sm:$0xff] }
 0x748   :  { %v2400_v43 = vpack.c.bf16 %v1706_v20, %v1705_v34 }
 0x749   :  { %v3129_v44 = vadd.f32 %v1517_v50, %v1516_v61 }
 0x74b   :  { %2530 = vtanh.f32 %v3129_v44 }
 0x755   :  { %v2531_v48 = vpop.eup %2530 }
 0x756   :  { %v1520_v9 = vmul.f32 %v2531_v48, %v2529_v5  ;;  %v1819_v5 = vld [vmem:[%s3153_s5] ss:$0 sm:$0xff] }
 0x758   :  { %1590 = vmatmul.mubr.f32.vlgmr.msra.gmra.mrb[14].mxu0 %v1520_v9  ;;  %1661 = vmatmul.mubr.f32.vlgmr.msra.gmra.mrb[14].mxu1 %v1520_v9 }
 0x759   :  { %2386 = vmatpush3.bf16.msra.mxu0 %v2385_v47  ;;  %1869 = vmatprep.mubr.msk.f32.mxu0 %vm2605_vm0, %v2602_v0  ;;  %v204_v0 = vadd.f32 %v2827_v15, %v150_v32 }
 0x75a   :  { %2387 = vmatprep.subr.bf16.mxu0 %v2604_v60 }
 0x75d   :  { %2389 = vmatpush3.bf16.msra.mxu0 %v2388_v37 }
 0x75e   :  { %2390 = vmatprep.subr.bf16.mxu0 %v2604_v60 }
 0x761   :  { %2392 = vmatpush3.bf16.msra.mxu0 %v2391_v25 }
 0x762   :  { %2393 = vmatprep.subr.bf16.mxu0 %v2604_v60 }
 0x765   :  { %2395 = vmatpush3.bf16.msra.mxu0 %v2394_v6 }
 0x766   :  { %2396 = vmatprep.subr.bf16.mxu0 %v2604_v60 }
 0x769   :  { %2398 = vmatpush3.bf16.msra.mxu0 %v2397_v4 }
 0x76a   :  { %2399 = vmatprep.subr.bf16.mxu0 %v2604_v60 }
 0x76d   :  { %2401 = vmatpush3.bf16.msra.mxu0 %v2400_v43 }
 0x76e   :  { %2402 = vmatprep.subr.bf16.mxu0 %v2604_v60 }
 0x771   :  { %2404 = vmatpush3.bf16.msra.mxu0 %v2403_v14 }
 0x772   :  { %2405 = vmatprep.subr.bf16.mxu0 %v2604_v60 }
 0x775   :  { %2407 = vmatpush3.bf16.msra.mxu0 %v2406_v23 }
 0x82b   :  { %v1591_v40 = vpop.f32.mrb[14].mxu0  ;;  %v1662_v41 = vpop.f32.mrb[14].mxu1 }
 0x82c   :  { %v1667_v45 = vadd.f32 %v1591_v40, %v203_v36  ;;  %v1593_v52 = vpop.f32.mrb[15].mxu0  ;;  %v1664_v53 = vpop.f32.mrb[15].mxu1  ;;  %v1669_v17 = vadd.f32 %v1662_v41, %v205_v12 }
 0x82d   :  { %v1668_v58 = vadd.f32 %v1593_v52, %v204_v0  ;;  %v1670_v3 = vadd.f32 %v1664_v53, %v206_v62 }
 0x82e   :  { %v1816_v1 = vmul.f32 -1.442695, %v1667_v45 }
 0x82f   :  { %v1817_v2 = vmul.f32 -1.442695, %v1668_v58  ;;  %v1818_v8 = vmul.f32 -1.442695, %v1670_v3 }
 0x830   :  { %2532 = vpow2.f32 %v1816_v1 }
 0x831   :  { %2534 = vpow2.f32 %v1817_v2 }
 0x832   :  { %2536 = vpow2.f32 %v1818_v8 }
 0x833   :  { %2538 = vtanh.f32 %v1669_v17 }
 0x83a   :  { %v2533_v15 = vpop.eup %2532 }
 0x83b   :  { %v2535_v21 = vpop.eup %2534  ;;  %v1674_v22 = vadd.f32 1.0, %v2533_v15 }
 0x83c   :  { %v1680_v16 = vadd.f32 1.0, %v2535_v21  ;;  %v2537_v29 = vpop.eup %2536 }
 0x83d   :  { %2540 = vrcp.f32 %v1674_v22  ;;  %v2539_v38 = vpop.eup %2538  ;;  %v1687_v46 = vadd.f32 1.0, %v2537_v29 }
 0x83e   :  { %2542 = vrcp.f32 %v1680_v16 }
 0x83f   :  { %2544 = vrcp.f32 %v1687_v46 }
 0x847   :  { %v2541_v39 = vpop.eup %2540 }
 0x848   :  { %v2543_v42 = vpop.eup %2542  ;;  %v1691_v31 = vmul.f32 %v2541_v39, %v2539_v38 }
 0x849   :  { %v1690_v33 = vmul.f32 %v2543_v42, %v3129_v44  ;;  %v2545_v56 = vpop.eup %2544 }
 0x84b   :  { %v1692_v50 = vadd.f32 %v1691_v31, %v1690_v33 }
 0x84d   :  { %2546 = vtanh.f32 %v1692_v50 }
 0x857   :  { %v2547_v51 = vpop.eup %2546 }
 0x858   :  { %v1694_v61 = vmul.f32 %v2547_v51, %v2545_v56 }
 0x85a   :  { %1870 = vmatmul.mubr.f32.vlgmr.msra.gmra.mrb[16].mxu0 %v1694_v61 }
 0x92d   :  { %v1784_v48 = vpop.f32.mrb[16].mxu0 }
 0x92e   :  { %v1785_v9 = vadd.f32 %v1819_v5, %v1784_v48  ;;  %v1871_v49 = vpop.f32.mrb[17].mxu0 }
 0x930   :  { %1788 = vst [vmem:[%s3154_s6] sm:$0xff] %v1785_v9 }
 0x931   :  { %1793 = vsyncpa [#allocation4], 1 }
 0x932   :  { %1794 = vsyncpa [#allocation6], 1 }

</bundles_post_ra>
